<compile_context>
chip_gen: v5e
topology: v5e:2x2
jax: 0.10.0
libtpu: 0.0.40
codegen_flags: <defaults>
</compile_context>

<pallas_src>
import jax
import jax.numpy as jnp
from jax.experimental import pallas as pl
from jax.experimental.pallas import tpu as pltpu

NUM_CLASSES = 3


# ------------------------------ helpers -------------------------------------

def _avg_pool(x, k):
    n, c, h, w = x.shape
    return x.reshape(n, c, h // k, k, w // k, k).mean(axis=(3, 5))


def _interp_matrix(out_size, in_size):
    """PyTorch F.interpolate(mode='bilinear', align_corners=False) 1-D weight matrix."""
    i = jnp.arange(out_size, dtype=jnp.float32)
    src = (i + 0.5) * (in_size / out_size) - 0.5
    src = jnp.maximum(src, 0.0)                      # PyTorch clamps negative source coords
    i0 = jnp.floor(src).astype(jnp.int32)
    i0 = jnp.minimum(i0, in_size - 1)
    i1 = jnp.minimum(i0 + 1, in_size - 1)
    frac = src - i0.astype(jnp.float32)
    oh0 = jax.nn.one_hot(i0, in_size, dtype=jnp.float32)
    oh1 = jax.nn.one_hot(i1, in_size, dtype=jnp.float32)
    return oh0 * (1.0 - frac)[:, None] + oh1 * frac[:, None]    # (out, in)


def init_params(key):
    ks = jax.random.split(key, 8)
    scale = 0.05
    return {
        # backbone stand-in projections (external injected module)
        "bb3_w": scale * jax.random.normal(ks[0], (3, 256), jnp.float32),
        "bb3_b": jnp.zeros((256,), jnp.float32),
        "bb4_w": scale * jax.random.normal(ks[1], (3, 512), jnp.float32),
        "bb4_b": jnp.zeros((512,), jnp.float32),
        # head stand-in: 1x1 conv 512 -> num_classes (external injected module)
        "head_w": scale * jax.random.normal(ks[2], (512, NUM_CLASSES), jnp.float32),
        "head_b": scale * jax.random.normal(ks[3], (NUM_CLASSES,), jnp.float32),
        # FCNskip.onebyone256 : Conv2d(256, num_classes, 1)
        "c256_w": scale * jax.random.normal(ks[4], (256, NUM_CLASSES), jnp.float32),
        "c256_b": scale * jax.random.normal(ks[5], (NUM_CLASSES,), jnp.float32),
        # FCNskip.bn : BatchNorm2d(num_classes)  (PyTorch default init, train-mode stats)
        "bn_g": jnp.ones((NUM_CLASSES,), jnp.float32),
        "bn_b": jnp.zeros((NUM_CLASSES,), jnp.float32),
    }


# ------------------------------ FCNskip forward ------------------------------

def fcnskip_forward(x, params):
    """n_upsample=16, encoder_name='resnet18', b_bilinear=True branch of FCNskip."""
    n, cin, h, w = x.shape
    c = NUM_CLASSES
    h16, w16, h32, w32 = h // 16, w // 16, h // 32, w // 32
    s16, s32 = h16 * w16, h32 * w32
    m3, m4 = n * s16, n * s32
    f32, bf16 = jnp.float32, jnp.bfloat16

    # --- backbone stand-in (external module): strided average pools, channels-first (Cin, M) ---
    # TODO(synk): real encoder is an injected resnet18 backbone; only tiny pooled maps cross XLA.
    p16t = jnp.transpose(_avg_pool(x, 16), (1, 0, 2, 3)).reshape(cin, m3)   # (3, M3)  ~1.5 KB
    p32t = jnp.transpose(_avg_pool(x, 32), (1, 0, 2, 3)).reshape(cin, m4)   # (3, M4)

    # --- constant interpolation operators (host-side, folded by XLA) ---
    # per-image 2x bilinear operator (separable factors, NO kron(eye(N), .) batch factor)
    up2t = jnp.kron(_interp_matrix(h16, h32), _interp_matrix(w16, w32)).T   # (S32, S16)
    # final 16x upsample: width operator + H-tiled block-diag kron(I_C, Ah) height operator (bf16)
    afwt = _interp_matrix(w, w16).T.astype(bf16)                            # (W16, W)
    afh = _interp_matrix(h, h16)                                            # (H, H16)
    TH = h if h <= 256 else 256
    if h % TH != 0:
        TH = h
    n_th = h // TH
    ah_tiles = afh.reshape(n_th, TH, h16)
    eye_c = jnp.eye(c, dtype=f32)
    ahb = jnp.einsum("ab,jrk->jarbk", eye_c, ah_tiles)
    ahb = ahb.reshape(n_th, c * TH, c * h16).astype(bf16)                   # (n_th, C*TH, C*H16)

    # ---------------- kernel 1: stem (projections + head + onebyone256 + 2x up + BN) -----------
    def stem_kernel(p16t_ref, p32t_ref, w3t_ref, b3_ref, w4t_ref, b4_ref,
                    wht_ref, bh_ref, wct_ref, bc_ref, up2t_ref, g_ref, beta_ref, o_ref):
        # backbone stand-in channel projections, channels-first: (Cout, Cin) @ (Cin, M) -> M lanes
        l3t = jnp.dot(w3t_ref[...], p16t_ref[...], preferred_element_type=f32) + b3_ref[...]
        l4t = jnp.dot(w4t_ref[...], p32t_ref[...], preferred_element_type=f32) + b4_ref[...]
        # layer4 = head(x['layer4'])  (1x1 conv 512 -> C) ; layer3 = onebyone256 (256 -> C)
        layer4t = jnp.dot(wht_ref[...], l4t, preferred_element_type=f32) + bh_ref[...]  # (C, M4)
        layer3t = jnp.dot(wct_ref[...], l3t, preferred_element_type=f32) + bc_ref[...]  # (C, M3)
        up2t_m = up2t_ref[...]                                                          # (S32, S16)
        # per-image 2x bilinear upsample (static loop over N) + skip add
        s_parts = []
        for ni in range(n):
            l4_i = layer4t[:, ni * s32:(ni + 1) * s32]                   # (C, S32)
            up_i = jnp.dot(l4_i, up2t_m, preferred_element_type=f32)     # (C, S16)
            s_parts.append(up_i + layer3t[:, ni * s16:(ni + 1) * s16])
        # x = bn(x + layer3): training-mode batch stats, centered two-pass variance
        inv_m = 1.0 / float(m3)
        mean = sum(jnp.sum(p, axis=1, keepdims=True) for p in s_parts) * inv_m          # (C, 1)
        var = sum(jnp.sum((p - mean) * (p - mean), axis=1, keepdims=True)
                  for p in s_parts) * inv_m                                             # (C, 1)
        scale = g_ref[...] * jax.lax.rsqrt(var + 1e-5)
        shift = beta_ref[...] - mean * scale
        for ni in range(n):
            o_ref[ni] = (s_parts[ni] * scale + shift).astype(o_ref.dtype)               # (C, S16)

    def _full(shape):
        nd = len(shape)
        return pl.BlockSpec(shape, lambda i, _nd=nd: (0,) * _nd)

    s_bn = pl.pallas_call(
        stem_kernel,
        out_shape=jax.ShapeDtypeStruct((n, c, s16), f32),
        grid=(1,),
        in_specs=[
            _full((cin, m3)),            # p16^T
            _full((cin, m4)),            # p32^T
            _full((256, cin)), _full((256, 1)),    # backbone stand-in 3->256
            _full((512, cin)), _full((512, 1)),    # backbone stand-in 3->512
            _full((c, 512)), _full((c, 1)),        # head 1x1
            _full((c, 256)), _full((c, 1)),        # onebyone256
            _full((s32, s16)),                     # per-image 2x bilinear operator
            _full((c, 1)), _full((c, 1)),          # bn gamma / beta
        ],
        out_specs=_full((n, c, s16)),
        compiler_params=pltpu.CompilerParams(dimension_semantics=("arbitrary",)),
    )(p16t, p32t,
      params["bb3_w"].T, params["bb3_b"].reshape(256, 1),
      params["bb4_w"].T, params["bb4_b"].reshape(512, 1),
      params["head_w"].T, params["head_b"].reshape(c, 1),
      params["c256_w"].T, params["c256_b"].reshape(c, 1),
      up2t,
      params["bn_g"].reshape(c, 1), params["bn_b"].reshape(c, 1))

    # zero-cost contiguous reshape -> exactly the layout kernel 2 consumes (no transpose, no copy)
    s_rows = s_bn.reshape(n, c * h16, w16)

    # ---------------- kernel 2: final bilinear upsample to the input resolution ----------------
    def final_kernel(s_ref, uwt_ref, ahb_ref, o_ref):
        # width resize of ALL channels in one matmul (bf16 operands, f32 accumulate)
        t = jnp.dot(s_ref[0].astype(bf16), uwt_ref[...],
                    preferred_element_type=f32)                          # (C*H16, W)
        # height resize of ALL channels in one block-diagonal matmul kron(I_C, Ah_tile)
        res = jnp.dot(ahb_ref[0], t.astype(bf16),
                      preferred_element_type=f32)                        # (C*TH, W)
        # lane-dense store (W multiple of 128 -> unmasked vst)
        o_ref[...] = res.reshape(1, c, TH, w).astype(o_ref.dtype)

    out = pl.pallas_call(
        final_kernel,
        out_shape=jax.ShapeDtypeStruct((n, c, h, w), f32),
        grid=(n, n_th),
        in_specs=[
            pl.BlockSpec((1, c * h16, w16), lambda i, j: (i, 0, 0)),     # per-image stem output
            pl.BlockSpec((w16, w), lambda i, j: (0, 0)),                 # resident width operator
            pl.BlockSpec((1, c * TH, c * h16), lambda i, j: (j, 0, 0)),  # per-H-tile height op
        ],
        out_specs=pl.BlockSpec((1, c, TH, w), lambda i, j: (i, 0, j, 0)),
        compiler_params=pltpu.CompilerParams(
            dimension_semantics=("parallel", "parallel"),
            vmem_limit_bytes=32 * 1024 * 1024),
    )(s_rows, afwt, ahb)
    return out                                   # NCHW, no post-kernel transpose


if __name__ == "__main__":
    key = jax.random.PRNGKey(0)
    k_x, k_p = jax.random.split(key)
    x = jax.random.normal(k_x, (2, 3, 128, 128), jnp.float32)   # NCHW, like PyTorch
    params = init_params(k_p)

    fwd = jax.jit(fcnskip_forward)
    out = jax.block_until_ready(fwd(x, params))
    assert out.shape == (2, NUM_CLASSES, 128, 128), out.shape
    assert bool(jnp.all(jnp.isfinite(out)))
    print("KERNEL_OK")
</pallas_src>

<mosaic_0001>
module attributes {stable_mosaic.version = 11 : i64} {
  func.func @stem_kernel(%arg0: i32, %arg1: memref<3x128xf32, #tpu.memory_space<vmem>>, %arg2: memref<3x32xf32, #tpu.memory_space<vmem>>, %arg3: memref<256x3xf32, #tpu.memory_space<vmem>>, %arg4: memref<256x1xf32, #tpu.memory_space<vmem>>, %arg5: memref<512x3xf32, #tpu.memory_space<vmem>>, %arg6: memref<512x1xf32, #tpu.memory_space<vmem>>, %arg7: memref<3x512xf32, #tpu.memory_space<vmem>>, %arg8: memref<3x1xf32, #tpu.memory_space<vmem>>, %arg9: memref<3x256xf32, #tpu.memory_space<vmem>>, %arg10: memref<3x1xf32, #tpu.memory_space<vmem>>, %arg11: memref<16x64xf32, #tpu.memory_space<vmem>>, %arg12: memref<3x1xf32, #tpu.memory_space<vmem>>, %arg13: memref<3x1xf32, #tpu.memory_space<vmem>>, %arg14: memref<2x3x64xf32, #tpu.memory_space<vmem>>) attributes {dimension_semantics = [#tpu.dimension_semantics<arbitrary>], iteration_bounds = array<i64: 1>, scalar_prefetch = 0 : i64, scratch_operands = 0 : i64, tpu.core_type = #tpu.core_type<tc>, window_params = [{pipeline_mode = #tpu.pipeline_mode<synchronous>, transform_indices = @transform_0, window_bounds = array<i64: 3, 128>}, {pipeline_mode = #tpu.pipeline_mode<synchronous>, transform_indices = @transform_1, window_bounds = array<i64: 3, 32>}, {pipeline_mode = #tpu.pipeline_mode<synchronous>, transform_indices = @transform_2, window_bounds = array<i64: 256, 3>}, {pipeline_mode = #tpu.pipeline_mode<synchronous>, transform_indices = @transform_3, window_bounds = array<i64: 256, 1>}, {pipeline_mode = #tpu.pipeline_mode<synchronous>, transform_indices = @transform_4, window_bounds = array<i64: 512, 3>}, {pipeline_mode = #tpu.pipeline_mode<synchronous>, transform_indices = @transform_5, window_bounds = array<i64: 512, 1>}, {pipeline_mode = #tpu.pipeline_mode<synchronous>, transform_indices = @transform_6, window_bounds = array<i64: 3, 512>}, {pipeline_mode = #tpu.pipeline_mode<synchronous>, transform_indices = @transform_7, window_bounds = array<i64: 3, 1>}, {pipeline_mode = #tpu.pipeline_mode<synchronous>, transform_indices = @transform_8, window_bounds = array<i64: 3, 256>}, {pipeline_mode = #tpu.pipeline_mode<synchronous>, transform_indices = @transform_9, window_bounds = array<i64: 3, 1>}, {pipeline_mode = #tpu.pipeline_mode<synchronous>, transform_indices = @transform_10, window_bounds = array<i64: 16, 64>}, {pipeline_mode = #tpu.pipeline_mode<synchronous>, transform_indices = @transform_11, window_bounds = array<i64: 3, 1>}, {pipeline_mode = #tpu.pipeline_mode<synchronous>, transform_indices = @transform_12, window_bounds = array<i64: 3, 1>}, {pipeline_mode = #tpu.pipeline_mode<synchronous>, transform_indices = @transform_13, window_bounds = array<i64: 2, 3, 64>}]} {
    %c0 = arith.constant 0 : index
    %c0_0 = arith.constant 0 : index
    %0 = vector.load %arg3[%c0, %c0_0] : memref<256x3xf32, #tpu.memory_space<vmem>>, vector<256x3xf32>
    %c0_1 = arith.constant 0 : index
    %c0_2 = arith.constant 0 : index
    %1 = vector.load %arg1[%c0_1, %c0_2] : memref<3x128xf32, #tpu.memory_space<vmem>>, vector<3x128xf32>
    %cst = arith.constant dense<0.000000e+00> : vector<256x128xf32>
    %2 = tpu.matmul %0, %1, %cst {dimension_numbers = #tpu.dot_dimension_numbers<[1], [0], [0], [1], [0, 0, 1, 1], [], []>} : vector<256x3xf32>, vector<3x128xf32>, vector<256x128xf32> -> vector<256x128xf32>
    %c0_3 = arith.constant 0 : index
    %c0_4 = arith.constant 0 : index
    %3 = vector.load %arg4[%c0_3, %c0_4] : memref<256x1xf32, #tpu.memory_space<vmem>>, vector<256x1xf32>
    %4 = vector.broadcast %3 : vector<256x1xf32> to vector<256x128xf32>
    %5 = arith.addf %2, %4 : vector<256x128xf32>
    %c0_5 = arith.constant 0 : index
    %c0_6 = arith.constant 0 : index
    %6 = vector.load %arg5[%c0_5, %c0_6] : memref<512x3xf32, #tpu.memory_space<vmem>>, vector<512x3xf32>
    %c0_7 = arith.constant 0 : index
    %c0_8 = arith.constant 0 : index
    %7 = vector.load %arg2[%c0_7, %c0_8] : memref<3x32xf32, #tpu.memory_space<vmem>>, vector<3x32xf32>
    %cst_9 = arith.constant dense<0.000000e+00> : vector<512x32xf32>
    %8 = tpu.matmul %6, %7, %cst_9 {dimension_numbers = #tpu.dot_dimension_numbers<[1], [0], [0], [1], [0, 0, 1, 1], [], []>} : vector<512x3xf32>, vector<3x32xf32>, vector<512x32xf32> -> vector<512x32xf32>
    %c0_10 = arith.constant 0 : index
    %c0_11 = arith.constant 0 : index
    %9 = vector.load %arg6[%c0_10, %c0_11] : memref<512x1xf32, #tpu.memory_space<vmem>>, vector<512x1xf32>
    %10 = vector.broadcast %9 : vector<512x1xf32> to vector<512x32xf32>
    %11 = arith.addf %8, %10 : vector<512x32xf32>
    %c0_12 = arith.constant 0 : index
    %c0_13 = arith.constant 0 : index
    %12 = vector.load %arg7[%c0_12, %c0_13] : memref<3x512xf32, #tpu.memory_space<vmem>>, vector<3x512xf32>
    %cst_14 = arith.constant dense<0.000000e+00> : vector<3x32xf32>
    %13 = tpu.matmul %12, %11, %cst_14 {dimension_numbers = #tpu.dot_dimension_numbers<[1], [0], [0], [1], [0, 0, 1, 1], [], []>} : vector<3x512xf32>, vector<512x32xf32>, vector<3x32xf32> -> vector<3x32xf32>
    %c0_15 = arith.constant 0 : index
    %c0_16 = arith.constant 0 : index
    %14 = vector.load %arg8[%c0_15, %c0_16] : memref<3x1xf32, #tpu.memory_space<vmem>>, vector<3x1xf32>
    %15 = vector.broadcast %14 : vector<3x1xf32> to vector<3x32xf32>
    %16 = arith.addf %13, %15 : vector<3x32xf32>
    %c0_17 = arith.constant 0 : index
    %c0_18 = arith.constant 0 : index
    %17 = vector.load %arg9[%c0_17, %c0_18] : memref<3x256xf32, #tpu.memory_space<vmem>>, vector<3x256xf32>
    %cst_19 = arith.constant dense<0.000000e+00> : vector<3x128xf32>
    %18 = tpu.matmul %17, %5, %cst_19 {dimension_numbers = #tpu.dot_dimension_numbers<[1], [0], [0], [1], [0, 0, 1, 1], [], []>} : vector<3x256xf32>, vector<256x128xf32>, vector<3x128xf32> -> vector<3x128xf32>
    %c0_20 = arith.constant 0 : index
    %c0_21 = arith.constant 0 : index
    %19 = vector.load %arg10[%c0_20, %c0_21] : memref<3x1xf32, #tpu.memory_space<vmem>>, vector<3x1xf32>
    %20 = vector.broadcast %19 : vector<3x1xf32> to vector<3x128xf32>
    %21 = arith.addf %18, %20 : vector<3x128xf32>
    %c0_22 = arith.constant 0 : index
    %c0_23 = arith.constant 0 : index
    %22 = vector.load %arg11[%c0_22, %c0_23] : memref<16x64xf32, #tpu.memory_space<vmem>>, vector<16x64xf32>
    %23 = vector.extract_strided_slice %16 {offsets = [0, 0], sizes = [3, 16], strides = [1, 1]} : vector<3x32xf32> to vector<3x16xf32>
    %cst_24 = arith.constant dense<0.000000e+00> : vector<3x64xf32>
    %24 = tpu.matmul %23, %22, %cst_24 {dimension_numbers = #tpu.dot_dimension_numbers<[1], [0], [0], [1], [0, 0, 1, 1], [], []>} : vector<3x16xf32>, vector<16x64xf32>, vector<3x64xf32> -> vector<3x64xf32>
    %25 = vector.extract_strided_slice %21 {offsets = [0, 0], sizes = [3, 64], strides = [1, 1]} : vector<3x128xf32> to vector<3x64xf32>
    %26 = arith.addf %24, %25 : vector<3x64xf32>
    %27 = vector.extract_strided_slice %16 {offsets = [0, 16], sizes = [3, 16], strides = [1, 1]} : vector<3x32xf32> to vector<3x16xf32>
    %cst_25 = arith.constant dense<0.000000e+00> : vector<3x64xf32>
    %28 = tpu.matmul %27, %22, %cst_25 {dimension_numbers = #tpu.dot_dimension_numbers<[1], [0], [0], [1], [0, 0, 1, 1], [], []>} : vector<3x16xf32>, vector<16x64xf32>, vector<3x64xf32> -> vector<3x64xf32>
    %29 = vector.extract_strided_slice %21 {offsets = [0, 64], sizes = [3, 64], strides = [1, 1]} : vector<3x128xf32> to vector<3x64xf32>
    %30 = arith.addf %28, %29 : vector<3x64xf32>
    %cst_26 = arith.constant dense<0.000000e+00> : vector<3xf32>
    %31 = vector.multi_reduction <add>, %26, %cst_26 [1] : vector<3x64xf32> to vector<3xf32>
    %32 = vector.shape_cast %31 : vector<3xf32> to vector<3x1xf32>
    %cst_27 = arith.constant 0.000000e+00 : f32
    %33 = vector.broadcast %cst_27 : f32 to vector<3x1xf32>
    %34 = arith.addf %33, %32 : vector<3x1xf32>
    %cst_28 = arith.constant dense<0.000000e+00> : vector<3xf32>
    %35 = vector.multi_reduction <add>, %30, %cst_28 [1] : vector<3x64xf32> to vector<3xf32>
    %36 = vector.shape_cast %35 : vector<3xf32> to vector<3x1xf32>
    %37 = arith.addf %34, %36 : vector<3x1xf32>
    %cst_29 = arith.constant 7.812500e-03 : f32
    %38 = vector.broadcast %cst_29 : f32 to vector<3x1xf32>
    %39 = arith.mulf %37, %38 : vector<3x1xf32>
    %40 = vector.broadcast %39 : vector<3x1xf32> to vector<3x64xf32>
    %41 = arith.subf %26, %40 : vector<3x64xf32>
    %42 = vector.broadcast %39 : vector<3x1xf32> to vector<3x64xf32>
    %43 = arith.subf %26, %42 : vector<3x64xf32>
    %44 = arith.mulf %41, %43 : vector<3x64xf32>
    %cst_30 = arith.constant dense<0.000000e+00> : vector<3xf32>
    %45 = vector.multi_reduction <add>, %44, %cst_30 [1] : vector<3x64xf32> to vector<3xf32>
    %46 = vector.shape_cast %45 : vector<3xf32> to vector<3x1xf32>
    %cst_31 = arith.constant 0.000000e+00 : f32
    %47 = vector.broadcast %cst_31 : f32 to vector<3x1xf32>
    %48 = arith.addf %47, %46 : vector<3x1xf32>
    %49 = vector.broadcast %39 : vector<3x1xf32> to vector<3x64xf32>
    %50 = arith.subf %30, %49 : vector<3x64xf32>
    %51 = vector.broadcast %39 : vector<3x1xf32> to vector<3x64xf32>
    %52 = arith.subf %30, %51 : vector<3x64xf32>
    %53 = arith.mulf %50, %52 : vector<3x64xf32>
    %cst_32 = arith.constant dense<0.000000e+00> : vector<3xf32>
    %54 = vector.multi_reduction <add>, %53, %cst_32 [1] : vector<3x64xf32> to vector<3xf32>
    %55 = vector.shape_cast %54 : vector<3xf32> to vector<3x1xf32>
    %56 = arith.addf %48, %55 : vector<3x1xf32>
    %cst_33 = arith.constant 7.812500e-03 : f32
    %57 = vector.broadcast %cst_33 : f32 to vector<3x1xf32>
    %58 = arith.mulf %56, %57 : vector<3x1xf32>
    %c0_34 = arith.constant 0 : index
    %c0_35 = arith.constant 0 : index
    %59 = vector.load %arg12[%c0_34, %c0_35] : memref<3x1xf32, #tpu.memory_space<vmem>>, vector<3x1xf32>
    %cst_36 = arith.constant 9.99999974E-6 : f32
    %60 = vector.broadcast %cst_36 : f32 to vector<3x1xf32>
    %61 = arith.addf %58, %60 : vector<3x1xf32>
    %62 = math.rsqrt %61 : vector<3x1xf32>
    %63 = arith.mulf %59, %62 : vector<3x1xf32>
    %c0_37 = arith.constant 0 : index
    %c0_38 = arith.constant 0 : index
    %64 = vector.load %arg13[%c0_37, %c0_38] : memref<3x1xf32, #tpu.memory_space<vmem>>, vector<3x1xf32>
    %65 = arith.mulf %39, %63 : vector<3x1xf32>
    %66 = arith.subf %64, %65 : vector<3x1xf32>
    %67 = vector.broadcast %63 : vector<3x1xf32> to vector<3x64xf32>
    %68 = arith.mulf %26, %67 : vector<3x64xf32>
    %69 = vector.broadcast %66 : vector<3x1xf32> to vector<3x64xf32>
    %70 = arith.addf %68, %69 : vector<3x64xf32>
    %c0_39 = arith.constant 0 : index
    %c0_40 = arith.constant 0 : index
    %c0_41 = arith.constant 0 : index
    %71 = vector.load %arg14[%c0_39, %c0_40, %c0_41] : memref<2x3x64xf32, #tpu.memory_space<vmem>>, vector<1x3x64xf32>
    %72 = vector.shape_cast %71 : vector<1x3x64xf32> to vector<3x64xf32>
    %73 = vector.shape_cast %70 : vector<3x64xf32> to vector<1x3x64xf32>
    tpu.vector_store %arg14[%c0_39, %c0_40, %c0_41], %73 {strides = array<i32>} : memref<2x3x64xf32, #tpu.memory_space<vmem>>, vector<1x3x64xf32>,
    %74 = vector.broadcast %63 : vector<3x1xf32> to vector<3x64xf32>
    %75 = arith.mulf %30, %74 : vector<3x64xf32>
    %76 = vector.broadcast %66 : vector<3x1xf32> to vector<3x64xf32>
    %77 = arith.addf %75, %76 : vector<3x64xf32>
    %c1 = arith.constant 1 : index
    %c0_42 = arith.constant 0 : index
    %c0_43 = arith.constant 0 : index
    %78 = vector.load %arg14[%c1, %c0_42, %c0_43] : memref<2x3x64xf32, #tpu.memory_space<vmem>>, vector<1x3x64xf32>
    %79 = vector.shape_cast %78 : vector<1x3x64xf32> to vector<3x64xf32>
    %80 = vector.shape_cast %77 : vector<3x64xf32> to vector<1x3x64xf32>
    tpu.vector_store %arg14[%c1, %c0_42, %c0_43], %80 {strides = array<i32>} : memref<2x3x64xf32, #tpu.memory_space<vmem>>, vector<1x3x64xf32>,
    return
  }
  func.func @transform_0(%arg0: i32) -> (i32, i32) {
    %c0_i32 = arith.constant 0 : i32
    %c0_i32_0 = arith.constant 0 : i32
    %c0_i32_1 = arith.constant 0 : i32
    return %c0_i32, %c0_i32_0 : i32, i32
  }
  func.func @transform_1(%arg0: i32) -> (i32, i32) {
    %c0_i32 = arith.constant 0 : i32
    %c0_i32_0 = arith.constant 0 : i32
    %c0_i32_1 = arith.constant 0 : i32
    return %c0_i32, %c0_i32_0 : i32, i32
  }
  func.func @transform_2(%arg0: i32) -> (i32, i32) {
    %c0_i32 = arith.constant 0 : i32
    %c0_i32_0 = arith.constant 0 : i32
    %c0_i32_1 = arith.constant 0 : i32
    return %c0_i32, %c0_i32_0 : i32, i32
  }
  func.func @transform_3(%arg0: i32) -> (i32, i32) {
    %c0_i32 = arith.constant 0 : i32
    %c0_i32_0 = arith.constant 0 : i32
    %c0_i32_1 = arith.constant 0 : i32
    return %c0_i32, %c0_i32_0 : i32, i32
  }
  func.func @transform_4(%arg0: i32) -> (i32, i32) {
    %c0_i32 = arith.constant 0 : i32
    %c0_i32_0 = arith.constant 0 : i32
    %c0_i32_1 = arith.constant 0 : i32
    return %c0_i32, %c0_i32_0 : i32, i32
  }
  func.func @transform_5(%arg0: i32) -> (i32, i32) {
    %c0_i32 = arith.constant 0 : i32
    %c0_i32_0 = arith.constant 0 : i32
    %c0_i32_1 = arith.constant 0 : i32
    return %c0_i32, %c0_i32_0 : i32, i32
  }
  func.func @transform_6(%arg0: i32) -> (i32, i32) {
    %c0_i32 = arith.constant 0 : i32
    %c0_i32_0 = arith.constant 0 : i32
    %c0_i32_1 = arith.constant 0 : i32
    return %c0_i32, %c0_i32_0 : i32, i32
  }
  func.func @transform_7(%arg0: i32) -> (i32, i32) {
    %c0_i32 = arith.constant 0 : i32
    %c0_i32_0 = arith.constant 0 : i32
    %c0_i32_1 = arith.constant 0 : i32
    return %c0_i32, %c0_i32_0 : i32, i32
  }
  func.func @transform_8(%arg0: i32) -> (i32, i32) {
    %c0_i32 = arith.constant 0 : i32
    %c0_i32_0 = arith.constant 0 : i32
    %c0_i32_1 = arith.constant 0 : i32
    return %c0_i32, %c0_i32_0 : i32, i32
  }
  func.func @transform_9(%arg0: i32) -> (i32, i32) {
    %c0_i32 = arith.constant 0 : i32
    %c0_i32_0 = arith.constant 0 : i32
    %c0_i32_1 = arith.constant 0 : i32
    return %c0_i32, %c0_i32_0 : i32, i32
  }
  func.func @transform_10(%arg0: i32) -> (i32, i32) {
    %c0_i32 = arith.constant 0 : i32
    %c0_i32_0 = arith.constant 0 : i32
    %c0_i32_1 = arith.constant 0 : i32
    return %c0_i32, %c0_i32_0 : i32, i32
  }
  func.func @transform_11(%arg0: i32) -> (i32, i32) {
    %c0_i32 = arith.constant 0 : i32
    %c0_i32_0 = arith.constant 0 : i32
    %c0_i32_1 = arith.constant 0 : i32
    return %c0_i32, %c0_i32_0 : i32, i32
  }
  func.func @transform_12(%arg0: i32) -> (i32, i32) {
    %c0_i32 = arith.constant 0 : i32
    %c0_i32_0 = arith.constant 0 : i32
    %c0_i32_1 = arith.constant 0 : i32
    return %c0_i32, %c0_i32_0 : i32, i32
  }
  func.func @transform_13(%arg0: i32) -> (i32, i32, i32) {
    %c0_i32 = arith.constant 0 : i32
    %c0_i32_0 = arith.constant 0 : i32
    %c0_i32_1 = arith.constant 0 : i32
    %c0_i32_2 = arith.constant 0 : i32
    return %c0_i32, %c0_i32_0, %c0_i32_1 : i32, i32, i32
  }
}

module attributes {stable_mosaic.version = 11 : i64} {
  func.func @final_kernel(%arg0: i32, %arg1: i32, %arg2: memref<1x24x8xf32, #tpu.memory_space<vmem>>, %arg3: memref<8x128xbf16, #tpu.memory_space<vmem>>, %arg4: memref<1x384x24xbf16, #tpu.memory_space<vmem>>, %arg5: memref<1x3x128x128xf32, #tpu.memory_space<vmem>>) attributes {dimension_semantics = [#tpu.dimension_semantics<parallel>, #tpu.dimension_semantics<parallel>], iteration_bounds = array<i64: 2, 1>, scalar_prefetch = 0 : i64, scratch_operands = 0 : i64, tpu.core_type = #tpu.core_type<tc>, window_params = [{transform_indices = @transform_0, window_bounds = array<i64: 1, 24, 8>}, {pipeline_mode = #tpu.pipeline_mode<synchronous>, transform_indices = @transform_1, window_bounds = array<i64: 8, 128>}, {transform_indices = @transform_2, window_bounds = array<i64: 1, 384, 24>}, {transform_indices = @transform_3, window_bounds = array<i64: 1, 3, 128, 128>}]} {
    %c0 = arith.constant 0 : index
    %c0_0 = arith.constant 0 : index
    %c0_1 = arith.constant 0 : index
    %0 = vector.load %arg2[%c0, %c0_0, %c0_1] : memref<1x24x8xf32, #tpu.memory_space<vmem>>, vector<1x24x8xf32>
    %1 = vector.shape_cast %0 : vector<1x24x8xf32> to vector<24x8xf32>
    %2 = arith.truncf %1 : vector<24x8xf32> to vector<24x8xbf16>
    %c0_2 = arith.constant 0 : index
    %c0_3 = arith.constant 0 : index
    %3 = vector.load %arg3[%c0_2, %c0_3] : memref<8x128xbf16, #tpu.memory_space<vmem>>, vector<8x128xbf16>
    %cst = arith.constant dense<0.000000e+00> : vector<24x128xf32>
    %4 = tpu.matmul %2, %3, %cst {dimension_numbers = #tpu.dot_dimension_numbers<[1], [0], [0], [1], [0, 0, 1, 1], [], []>} : vector<24x8xbf16>, vector<8x128xbf16>, vector<24x128xf32> -> vector<24x128xf32>
    %c0_4 = arith.constant 0 : index
    %c0_5 = arith.constant 0 : index
    %c0_6 = arith.constant 0 : index
    %5 = vector.load %arg4[%c0_4, %c0_5, %c0_6] : memref<1x384x24xbf16, #tpu.memory_space<vmem>>, vector<1x384x24xbf16>
    %6 = vector.shape_cast %5 : vector<1x384x24xbf16> to vector<384x24xbf16>
    %7 = arith.truncf %4 : vector<24x128xf32> to vector<24x128xbf16>
    %cst_7 = arith.constant dense<0.000000e+00> : vector<384x128xf32>
    %8 = tpu.matmul %6, %7, %cst_7 {dimension_numbers = #tpu.dot_dimension_numbers<[1], [0], [0], [1], [0, 0, 1, 1], [], []>} : vector<384x24xbf16>, vector<24x128xbf16>, vector<384x128xf32> -> vector<384x128xf32>
    %9 = vector.shape_cast %8 : vector<384x128xf32> to vector<1x3x128x128xf32>
    %c0_8 = arith.constant 0 : index
    %c0_9 = arith.constant 0 : index
    %c0_10 = arith.constant 0 : index
    %c0_11 = arith.constant 0 : index
    %10 = vector.load %arg5[%c0_8, %c0_9, %c0_10, %c0_11] : memref<1x3x128x128xf32, #tpu.memory_space<vmem>>, vector<1x3x128x128xf32>
    tpu.vector_store %arg5[%c0_8, %c0_9, %c0_10, %c0_11], %9 {strides = array<i32>} : memref<1x3x128x128xf32, #tpu.memory_space<vmem>>, vector<1x3x128x128xf32>,
    return
  }
  func.func @transform_0(%arg0: i32, %arg1: i32) -> (i32, i32, i32) {
    %c0_i32 = arith.constant 0 : i32
    %c0_i32_0 = arith.constant 0 : i32
    %c0_i32_1 = arith.constant 0 : i32
    return %arg0, %c0_i32, %c0_i32_0 : i32, i32, i32
  }
  func.func @transform_1(%arg0: i32, %arg1: i32) -> (i32, i32) {
    %c0_i32 = arith.constant 0 : i32
    %c0_i32_0 = arith.constant 0 : i32
    %c0_i32_1 = arith.constant 0 : i32
    return %c0_i32, %c0_i32_0 : i32, i32
  }
  func.func @transform_2(%arg0: i32, %arg1: i32) -> (i32, i32, i32) {
    %c0_i32 = arith.constant 0 : i32
    %c0_i32_0 = arith.constant 0 : i32
    %c0_i32_1 = arith.constant 0 : i32
    return %arg1, %c0_i32, %c0_i32_0 : i32, i32, i32
  }
  func.func @transform_3(%arg0: i32, %arg1: i32) -> (i32, i32, i32, i32) {
    %c0_i32 = arith.constant 0 : i32
    %c0_i32_0 = arith.constant 0 : i32
    %c0_i32_1 = arith.constant 0 : i32
    return %arg0, %c0_i32, %arg1, %c0_i32_0 : i32, i32, i32, i32
  }
}

</mosaic_0001>

<bundles_post_ra>
// kernel: fcnskip_forward.3
= control target key start
LH: loop header
LB: loop body
LE: loop exit
PB: predicated region body
PF: predicated region fallthrough
CT: control target
= control target key end

     0   :  { %8 = vsyncpa [#allocation3], 0  ;;  %s1346_s0 = inlined_call_operand.vmem [shape: f32[2,24,8], index: 0, kind: input, shape index: {}]   ;;  %s1347_s1 = inlined_call_operand.vmem [shape: bf16[8,128], index: 1, kind: input, shape index: {}]   ;;  %s1348_s2 = inlined_call_operand.vmem [shape: bf16[1,384,24], index: 2, kind: input, shape index: {}]   ;;  %s1349_s3 = inlined_call_operand.hbm [shape: f32[2,3,128,128], index: 3, kind: output, shape index: {}]  }
   0x1   :  { %10 = vsyncpa [#allocation3 + $0x1], 0  ;;  %s1093_s12 = smov 0   ;;  %s1095_s13 = smov 0  }
   0x2   :  { %s1097_s14 = smov 0   ;;  %s1099_s15 = smov 0  }
   0x3   :  { %s1101_s16 = smov 0   ;;  %s1103_s17 = smov 0  }
   0x4 LB: > { %s769_s18 = sadd.s32 4294967295, %s1069_s17   ;;  %s770_s19 = sadd.s32 4294967294, %s1069_s17   ;;  %s1069_s17 = sphi %s1103_s17, %s16_s17   ;;  %s1065_s16 = sphi %s1101_s16, %s1356_s16   ;;  %s1061_s15 = sphi %s1099_s15, %s1355_s15   ;;  %s1057_s14 = sphi %s1097_s14, %s1354_s14   ;;  %s1053_s13 = sphi %s1095_s13, %s1353_s13   ;;  %s1049_s12 = sphi %s1093_s12, %s1352_s12  }
   0x5   : > { %s28_s20 = sadd.s32 1, %s1065_s16  ;;  %s110_s21 = sadd.s32 1, %s1057_s14 }
   0x6   : > { %p30_p0 = scmp.ge.s32.totalorder %s28_s20, 2  ;;  %p120_p1 = scmp.ne.s32.totalorder %s1057_s14, %s1053_s13 }
   0x7   : > { %p121_p2 = scmp.eq.s32.totalorder %s769_s18, 1  ;;  %p126_p3 = scmp.ne.s32.totalorder %s1053_s13, %s1049_s12 }
   0x8   : > { %s1358_s20 = smov (%p30_p0, %s28_s20), 0  ;;  %p127_p5 = scmp.eq.s32.totalorder %s770_s19, 1 }
   0x9   : > { %p1133_p4 = por %p121_p2, %p120_p1  ;;  %s105_s23 = ssub.s32 %s1065_s16, %s1358_s20 }
   0xa   : > { %p774_p6 = scmp.ge.s32.totalorder %s1069_s17, 1  ;;  %p108_p7 = scmp.eq.s32.totalorder %s105_s23, 0 }
   0xb   : > { %p1140_p8 = por %p127_p5, %p126_p3  ;;  %p164_p9 = scmp.lt.s32.totalorder %s1069_s17, 3 }
   0xc   : > { %s1146_s25 = scalar_select %p108_p7, %s1057_s14, %s110_s21  }
   0xd   : > { %p165_p10 = pnand %p774_p6, %p164_p9 }
   0xe   : > { %p193_p11 = scmp.lt.s32.totalorder (!%p165_p10), %s1061_s15, 1  ;;  %s190_s30 = sand.u32 (!%p165_p10), 1, %s1053_s13  }
   0xf   : > { %168 = sbr.rel (%p165_p10) target bundleno = 422 (0x1a6), region = 32  ;;  %s1011_s26 = scalar_lea.hbm (!%p165_p10), %s1349_s3, 768 }
  0x10   : > { %s931_s4 = smul.u32 (!%p165_p10), 384, %s190_s30 }
  0x11   : > { %s933_s6 = smul.u32 (!%p165_p10), 384, %s1061_s15 }
  0x13   : > { %s677_s9 = scalar_lea.hbm (!%p165_p10), %s1349_s3, %s933_s6 }
  0x14   : > { %v210_v0 = vld [vmem:[%s1347_s1] sm:$0xf]  ;;  %vm218_vm0 = vcmask 1043456   ;;  %s194_s28 = scalar_select %p193_p11, %s1061_s15, 1  ;;  %vm211_vm1 = vcmask 64512   ;;  %v904_v13 = vld [vmem:[%s1348_s2 + $0x18] sm:$0xff] }
  0x15   : > { %v220_v1 = vsel %vm218_vm0, %v210_v0, 0  ;;  %vm410_vm2 = vcmask 195584   ;;  %v911_v15 = vld [vmem:[%s1348_s2 + $0x50] sm:$0xff]  ;;  %v918_v16 = vld [vmem:[%s1348_s2 + $0x88] sm:$0xff]  ;;  %v905_v17 = vld [vmem:[%s1348_s2 + $0x20] sm:$0xff]  ;;  %s680_s11 = sshll.u32 %s677_s9, 4  ;;  %s681_s11 = int_to_ptr.hbm [resolvable:$true] %s680_s11 }
  0x16   : > { %229 = vmatpush.bf16.msra.mxu0 %v220_v1  ;;  %s932_s29 = smul.u32 24, %s194_s28  ;;  %v912_v18 = vld [vmem:[%s1348_s2 + $0x58] sm:$0xff]  ;;  %v919_v19 = vld [vmem:[%s1348_s2 + $0x90] sm:$0xff]  ;;  %v901_v20 = vld [vmem:[%s1348_s2] sm:$0xff]  ;;  %s664_s15 = scalar_lea.sflag [#allocation3], %s190_s30 }
  0x17   : > { %v906_v21 = vld [vmem:[%s1348_s2 + $0x28] sm:$0xff]  ;;  %v913_v22 = vld [vmem:[%s1348_s2 + $0x60] sm:$0xff]  ;;  %v920_v23 = vld [vmem:[%s1348_s2 + $0x98] sm:$0xff]  ;;  %s1005_s18 = sshra.s32 %s681_s11, 4  ;;  %s1006_s18 = int_to_ptr.hbm [resolvable:$true] %s1005_s18 }
  0x18   : > { %s197_s5 = scalar_lea.vmem %s1346_s0, %s932_s29  ;;  %v902_v24 = vld [vmem:[%s1348_s2 + $0x8] sm:$0xff]  ;;  %v907_v25 = vld [vmem:[%s1348_s2 + $0x30] sm:$0xff]  ;;  %v921_v27 = vld [vmem:[%s1348_s2 + $0xa0] sm:$0xff]  ;;  %s1007_s19 = scalar_lea.hbm %s1006_s18, 384 }
  0x19   : > { %v205_v2 = vld [vmem:[%s197_s5] sm:$0xff]  ;;  %v206_v3 = vld [vmem:[%s197_s5 + $0x8] sm:$0xff]  ;;  %v207_v5 = vld [vmem:[%s197_s5 + $0x10] sm:$0xff]  ;;  %s1257_s5 = scalar_lea.vmem [#allocation2], %s931_s4  ;;  %p1008_p12 = scmp.ne.s32.totalorder %s1006_s18, %s1007_s19 }
  0x1a   : > { %v208_v4 = vpack.c.bf16 %v206_v3, %v205_v2  ;;  %v209_v6 = vpack.c.bf16 %v207_v5, %v207_v5  ;;  %v914_v26 = vld [vmem:[%s1348_s2 + $0x68] sm:$0xff]  ;;  %v903_v28 = vld [vmem:[%s1348_s2 + $0x10] sm:$0xff]  ;;  %v908_v29 = vld [vmem:[%s1348_s2 + $0x38] sm:$0xff]  ;;  %s678_s10 = sshll.u32 %s1257_s5, 4  ;;  %p1012_p1 = scmp.lt.s32.totalorder %s1006_s18, %s1349_s3  ;;  %s679_s10 = int_to_ptr.vmem [resolvable:$true] %s678_s10 }
  0x1b   : > { %v915_v30 = vld [vmem:[%s1348_s2 + $0x70] sm:$0xff]  ;;  %v922_v31 = vld [vmem:[%s1348_s2 + $0xa8] sm:$0xff]  ;;  %v909_v32 = vld [vmem:[%s1348_s2 + $0x40] sm:$0xff]  ;;  %p1009_p13 = pnand %p1008_p12, %p1133_p4  ;;  %p1013_p2 = scmp.lt.s32.totalorder %s1011_s26, %s1007_s19 }
  0x1c   : > { %776 = vmatmul.msk.bf16.vlgmr.msra.gmra.mxu0 %vm211_vm1, %v208_v4  ;;  %v916_v33 = vld [vmem:[%s1348_s2 + $0x78] sm:$0xff]  ;;  %v923_v34 = vld [vmem:[%s1348_s2 + $0xb0] sm:$0xff]  ;;  %v910_v35 = vld [vmem:[%s1348_s2 + $0x48] sm:$0xff] }
  0x1d   : > { %v917_v36 = vld [vmem:[%s1348_s2 + $0x80] sm:$0xff]  ;;  %v924_v37 = vld [vmem:[%s1348_s2 + $0xb8] sm:$0xff]  ;;  %p1010_p0 = pneg %p1009_p13  ;;  %p1014_p3 = por %p1013_p2, %p1012_p1 }
  0x1f   : > { %p1015_p5 = pnand %p1014_p3, %p1010_p0 }
  0x2c   : > { %777 = vmatmul.msk.bf16.gmra.mxu0 %vm211_vm1, %v209_v6 }
  0x99   : > { %v231_v7 = vpop.f32.mrf.mxu0 }
  0xa1   : > { %v233_v8 = vpop.f32.mrf.mxu0 }
  0xa2   : > { %v288_v12 = vpack.c.bf16 %v233_v8, %v231_v7 }
  0xa9   : > { %v236_v9 = vpop.f32.mrf.mxu0 }
  0xaa   : > { %v289_v10 = vpack.c.bf16 %v236_v9, %v236_v9 }
  0xac   : > { %v484_v11 = vsel %vm218_vm0, %v289_v10, 0 }
  0xad   : > { %492 = vmatpush.bf16.msrb.mxu0 %v484_v11  ;;  %925 = vmatpush.bf16.msra.mxu1 %v484_v11 }
  0xae   : > { %926 = vmatpush.bf16.msra.mxu2 %v484_v11  ;;  %927 = vmatpush.bf16.msra.mxu3 %v484_v11 }
  0xb1   : > { %v238_v14 = vpop.f32.mrf.mxu0  ;;  %493 = vmatpush.bf16.msrb.mxu0 %v288_v12  ;;  %928 = vmatpush.bf16.msra.mxu1 %v288_v12 }
  0xb2   : > { %929 = vmatpush.bf16.msra.mxu2 %v288_v12  ;;  %930 = vmatpush.bf16.msra.mxu3 %v288_v12 }
  0xb4   : > { %877 = vmatmul.msk.bf16.vlgmr.msra.gmra.mxu1 %vm410_vm2, %v904_v13  ;;  %874 = vmatmul.msk.bf16.vlgmr.msrb.gmra.mxu0 %vm410_vm2, %v901_v20 }
  0xb5   : > { %884 = vmatmul.msk.bf16.vlgmr.msra.gmra.mxu2 %vm410_vm2, %v911_v15  ;;  %891 = vmatmul.msk.bf16.vlgmr.msra.gmra.mxu3 %vm410_vm2, %v918_v16 }
  0xc4   : > { %878 = vmatmul.msk.bf16.gmra.mxu1 %vm410_vm2, %v905_v17  ;;  %875 = vmatmul.msk.bf16.gmra.mxu0 %vm410_vm2, %v902_v24 }
  0xc5   : > { %885 = vmatmul.msk.bf16.gmra.mxu2 %vm410_vm2, %v912_v18  ;;  %892 = vmatmul.msk.bf16.gmra.mxu3 %vm410_vm2, %v919_v19 }
  0xd4   : > { %879 = vmatmul.msk.bf16.gmra.mxu1 %vm410_vm2, %v906_v21  ;;  %876 = vmatmul.msk.bf16.gmra.mxu0 %vm410_vm2, %v903_v28 }
  0xd5   : > { %886 = vmatmul.msk.bf16.gmra.mxu2 %vm410_vm2, %v913_v22  ;;  %893 = vmatmul.msk.bf16.gmra.mxu3 %vm410_vm2, %v920_v23 }
  0xe4   : > { %880 = vmatmul.msk.bf16.gmra.mxu1 %vm410_vm2, %v907_v25 }
  0xe5   : > { %887 = vmatmul.msk.bf16.gmra.mxu2 %vm410_vm2, %v914_v26  ;;  %894 = vmatmul.msk.bf16.gmra.mxu3 %vm410_vm2, %v921_v27 }
  0xf4   : > { %881 = vmatmul.msk.bf16.gmra.mxu1 %vm410_vm2, %v908_v29 }
  0xf5   : > { %888 = vmatmul.msk.bf16.gmra.mxu2 %vm410_vm2, %v915_v30  ;;  %895 = vmatmul.msk.bf16.gmra.mxu3 %vm410_vm2, %v922_v31 }
 0x104   : > { %882 = vmatmul.msk.bf16.gmra.mxu1 %vm410_vm2, %v909_v32 }
 0x105   : > { %889 = vmatmul.msk.bf16.gmra.mxu2 %vm410_vm2, %v916_v33  ;;  %896 = vmatmul.msk.bf16.gmra.mxu3 %vm410_vm2, %v923_v34 }
 0x114   : > { %883 = vmatmul.msk.bf16.gmra.mxu1 %vm410_vm2, %v910_v35 }
 0x115   : > { %890 = vmatmul.msk.bf16.gmra.mxu2 %vm410_vm2, %v917_v36  ;;  %897 = vmatmul.msk.bf16.gmra.mxu3 %vm410_vm2, %v924_v37 }
 0x131   : > { %v510_v38 = vpop.f32.mrf.mxu1  ;;  %v495_v48 = vpop.f32.mrf.mxu0 }
 0x132   : > { %621 = vst [vmem:[%s1257_s5 + $0x30] sm:$0xff] %v510_v38 }
 0x133   : > { %615 = vst [vmem:[%s1257_s5] sm:$0xff] %v495_v48 }
 0x138   : > { %v545_v39 = vpop.f32.mrf.mxu2  ;;  %v580_v40 = vpop.f32.mrf.mxu3 }
 0x139   : > { %635 = vst [vmem:[%s1257_s5 + $0xa0] sm:$0xff] %v545_v39  ;;  %v512_v41 = vpop.f32.mrf.mxu1  ;;  %v497_v52 = vpop.f32.mrf.mxu0 }
 0x13a   : > { %649 = vst [vmem:[%s1257_s5 + $0x110] sm:$0xff] %v580_v40 }
 0x13b   : > { %622 = vst [vmem:[%s1257_s5 + $0x38] sm:$0xff] %v512_v41 }
 0x13c   : > { %616 = vst [vmem:[%s1257_s5 + $0x8] sm:$0xff] %v497_v52 }
 0x140   : > { %v547_v42 = vpop.f32.mrf.mxu2  ;;  %v582_v43 = vpop.f32.mrf.mxu3 }
 0x141   : > { %636 = vst [vmem:[%s1257_s5 + $0xa8] sm:$0xff] %v547_v42  ;;  %v515_v44 = vpop.f32.mrf.mxu1  ;;  %v500_v56 = vpop.f32.mrf.mxu0 }
 0x142   : > { %650 = vst [vmem:[%s1257_s5 + $0x118] sm:$0xff] %v582_v43 }
 0x143   : > { %623 = vst [vmem:[%s1257_s5 + $0x40] sm:$0xff] %v515_v44 }
 0x144   : > { %617 = vst [vmem:[%s1257_s5 + $0x10] sm:$0xff] %v500_v56 }
 0x148   : > { %v550_v45 = vpop.f32.mrf.mxu2  ;;  %v585_v46 = vpop.f32.mrf.mxu3 }
 0x149   : > { %637 = vst [vmem:[%s1257_s5 + $0xb0] sm:$0xff] %v550_v45  ;;  %v517_v47 = vpop.f32.mrf.mxu1  ;;  %v502_v60 = vpop.f32.mrf.mxu0 }
 0x14a   : > { %651 = vst [vmem:[%s1257_s5 + $0x120] sm:$0xff] %v585_v46 }
 0x14b   : > { %624 = vst [vmem:[%s1257_s5 + $0x48] sm:$0xff] %v517_v47 }
 0x14c   : > { %618 = vst [vmem:[%s1257_s5 + $0x18] sm:$0xff] %v502_v60 }
 0x150   : > { %v552_v49 = vpop.f32.mrf.mxu2  ;;  %v587_v50 = vpop.f32.mrf.mxu3 }
 0x151   : > { %638 = vst [vmem:[%s1257_s5 + $0xb8] sm:$0xff] %v552_v49  ;;  %v520_v51 = vpop.f32.mrf.mxu1  ;;  %v505_v0 = vpop.f32.mrf.mxu0 }
 0x152   : > { %652 = vst [vmem:[%s1257_s5 + $0x128] sm:$0xff] %v587_v50 }
 0x153   : > { %625 = vst [vmem:[%s1257_s5 + $0x50] sm:$0xff] %v520_v51 }
 0x154   : > { %619 = vst [vmem:[%s1257_s5 + $0x20] sm:$0xff] %v505_v0 }
 0x158   : > { %v555_v53 = vpop.f32.mrf.mxu2  ;;  %v590_v54 = vpop.f32.mrf.mxu3 }
 0x159   : > { %639 = vst [vmem:[%s1257_s5 + $0xc0] sm:$0xff] %v555_v53  ;;  %v522_v55 = vpop.f32.mrf.mxu1  ;;  %v507_v4 = vpop.f32.mrf.mxu0 }
 0x15a   : > { %653 = vst [vmem:[%s1257_s5 + $0x130] sm:$0xff] %v590_v54 }
 0x15b   : > { %626 = vst [vmem:[%s1257_s5 + $0x58] sm:$0xff] %v522_v55 }
 0x15c   : > { %620 = vst [vmem:[%s1257_s5 + $0x28] sm:$0xff] %v507_v4 }
 0x160   : > { %v557_v57 = vpop.f32.mrf.mxu2  ;;  %v592_v58 = vpop.f32.mrf.mxu3 }
 0x161   : > { %640 = vst [vmem:[%s1257_s5 + $0xc8] sm:$0xff] %v557_v57  ;;  %v525_v59 = vpop.f32.mrf.mxu1 }
 0x162   : > { %654 = vst [vmem:[%s1257_s5 + $0x138] sm:$0xff] %v592_v58 }
 0x163   : > { %627 = vst [vmem:[%s1257_s5 + $0x60] sm:$0xff] %v525_v59 }
 0x168   : > { %v560_v61 = vpop.f32.mrf.mxu2  ;;  %v595_v62 = vpop.f32.mrf.mxu3 }
 0x169   : > { %641 = vst [vmem:[%s1257_s5 + $0xd0] sm:$0xff] %v560_v61  ;;  %v527_v63 = vpop.f32.mrf.mxu1 }
 0x16a   : > { %655 = vst [vmem:[%s1257_s5 + $0x140] sm:$0xff] %v595_v62 }
 0x16b   : > { %628 = vst [vmem:[%s1257_s5 + $0x68] sm:$0xff] %v527_v63 }
 0x170   : > { %v562_v1 = vpop.f32.mrf.mxu2  ;;  %v597_v2 = vpop.f32.mrf.mxu3 }
 0x171   : > { %642 = vst [vmem:[%s1257_s5 + $0xd8] sm:$0xff] %v562_v1  ;;  %v530_v3 = vpop.f32.mrf.mxu1 }
 0x172   : > { %656 = vst [vmem:[%s1257_s5 + $0x148] sm:$0xff] %v597_v2 }
 0x173   : > { %629 = vst [vmem:[%s1257_s5 + $0x70] sm:$0xff] %v530_v3 }
 0x178   : > { %v565_v5 = vpop.f32.mrf.mxu2  ;;  %v600_v6 = vpop.f32.mrf.mxu3 }
 0x179   : > { %643 = vst [vmem:[%s1257_s5 + $0xe0] sm:$0xff] %v565_v5  ;;  %v532_v7 = vpop.f32.mrf.mxu1 }
 0x17a   : > { %657 = vst [vmem:[%s1257_s5 + $0x150] sm:$0xff] %v600_v6 }
 0x17b   : > { %630 = vst [vmem:[%s1257_s5 + $0x78] sm:$0xff] %v532_v7 }
 0x180   : > { %v567_v8 = vpop.f32.mrf.mxu2  ;;  %v602_v9 = vpop.f32.mrf.mxu3 }
 0x181   : > { %644 = vst [vmem:[%s1257_s5 + $0xe8] sm:$0xff] %v567_v8  ;;  %v535_v10 = vpop.f32.mrf.mxu1 }
 0x182   : > { %658 = vst [vmem:[%s1257_s5 + $0x158] sm:$0xff] %v602_v9 }
 0x183   : > { %631 = vst [vmem:[%s1257_s5 + $0x80] sm:$0xff] %v535_v10 }
 0x188   : > { %v570_v11 = vpop.f32.mrf.mxu2  ;;  %v605_v12 = vpop.f32.mrf.mxu3 }
 0x189   : > { %645 = vst [vmem:[%s1257_s5 + $0xf0] sm:$0xff] %v570_v11  ;;  %v537_v13 = vpop.f32.mrf.mxu1 }
 0x18a   : > { %659 = vst [vmem:[%s1257_s5 + $0x160] sm:$0xff] %v605_v12 }
 0x18b   : > { %632 = vst [vmem:[%s1257_s5 + $0x88] sm:$0xff] %v537_v13 }
 0x190   : > { %v572_v14 = vpop.f32.mrf.mxu2  ;;  %v607_v15 = vpop.f32.mrf.mxu3 }
 0x191   : > { %646 = vst [vmem:[%s1257_s5 + $0xf8] sm:$0xff] %v572_v14  ;;  %v540_v16 = vpop.f32.mrf.mxu1 }
 0x192   : > { %660 = vst [vmem:[%s1257_s5 + $0x168] sm:$0xff] %v607_v15 }
 0x193   : > { %633 = vst [vmem:[%s1257_s5 + $0x90] sm:$0xff] %v540_v16 }
 0x198   : > { %v575_v17 = vpop.f32.mrf.mxu2  ;;  %v610_v18 = vpop.f32.mrf.mxu3 }
 0x199   : > { %647 = vst [vmem:[%s1257_s5 + $0x100] sm:$0xff] %v575_v17  ;;  %v542_v19 = vpop.f32.mrf.mxu1 }
 0x19a   : > { %661 = vst [vmem:[%s1257_s5 + $0x170] sm:$0xff] %v610_v18 }
 0x19b   : > { %634 = vst [vmem:[%s1257_s5 + $0x98] sm:$0xff] %v542_v19 }
 0x1a0   : > { %v577_v20 = vpop.f32.mrf.mxu2  ;;  %v612_v21 = vpop.f32.mrf.mxu3 }
 0x1a1   : > { %648 = vst [vmem:[%s1257_s5 + $0x108] sm:$0xff] %v577_v20 }
 0x1a2   : > { %662 = vst [vmem:[%s1257_s5 + $0x178] sm:$0xff] %v612_v21 }
 0x1a3   : > { %1018 = shalt.err (!%p1015_p5)
}
 0x1a4   : > { %s1071_s29 = smov 128   ;;  %s1072_s30 = smov 8  }
 0x1a5   : > { %934 = dma.vmem_to_hbm [thread:$0]  (%p1133_p4), %s679_s10, 6144, %s681_s11, %s664_s15, %s1071_s29, %s1071_s29, %s1072_s30  }
 0x1a6 PF: > { %p940_p6 = scmp.ge.s32.totalorder %s1069_s17, 2  ;;  %s695_s4 = sand.u32 1, %s1049_s12  }
 0x1a7   : > { %s696_s5 = scalar_lea.sflag [#allocation3], %s695_s4 }
 0x1a8   : > { %p937_p7 = pnand %p940_p6, %p1140_p8 }
 0x1aa   : > { %p938_p9 = pneg %p937_p7 }
 0x1ac   : > { %1044 = dma.done.wait (%p938_p9), %s696_s5, 6144  }
 0x1ad   : > { %1046 = vsyncadd (%p938_p9), %s696_s5, 4294961152  ;;  %s16_s17 = sadd.s32 1, %s1069_s17   ;;  %s1352_s12 = smov %s1053_s13 }
 0x1ae   : > { %p13_p10 = scmp.ge.s32.totalorder %s16_s17, 4   ;;  %s1353_s13 = smov %s1057_s14 }
 0x1af   : > { %s1354_s14 = smov %s1146_s25  ;;  %s1355_s15 = smov %s1065_s16 }
 0x1b0   : > { %s1356_s16 = smov %s1358_s20  ;;  %15 = sbr.rel (!%p13_p10) target bundleno = 4 (0x4), region = 70 }
 0x1b5   :  { %702 = vsyncpa [#allocation3], 1 }
 0x1b6   :  { %704 = vsyncpa [#allocation3 + $0x1], 1 }

// kernel: fcnskip_forward.2
= control target key start
LH: loop header
LB: loop body
LE: loop exit
PB: predicated region body
PF: predicated region fallthrough
CT: control target
= control target key end

     0   :  { %v1716_v0 = vmov 0   ;;  %vm366_vm0 = vcmask 1042432   ;;  %vm269_vm1 = vcmask 23552   ;;  %vm1492_vm2 = vcmask 130048   ;;  %s1717_s19 = smov 112   ;;  %s2904_s3 = inlined_call_operand.vmem [shape: f32[256,1], index: 3, kind: input, shape index: {}]   ;;  %s2905_s0 = inlined_call_operand.vmem [shape: f32[3,128], index: 0, kind: input, shape index: {}]   ;;  %s2906_s1 = inlined_call_operand.vmem [shape: f32[3,32], index: 1, kind: input, shape index: {}]   ;;  %s2907_s2 = inlined_call_operand.vmem [shape: f32[256,3], index: 2, kind: input, shape index: {}]   ;;  %s2908_s4 = inlined_call_operand.vmem [shape: f32[512,3], index: 4, kind: input, shape index: {}]   ;;  %s2909_s5 = inlined_call_operand.vmem [shape: f32[512,1], index: 5, kind: input, shape index: {}]   ;;  %s2910_s6 = inlined_call_operand.vmem [shape: f32[3,512], index: 6, kind: input, shape index: {}]   ;;  %s2911_s7 = inlined_call_operand.vmem [shape: f32[3,1], index: 7, kind: input, shape index: {}]   ;;  %s2912_s9 = inlined_call_operand.vmem [shape: f32[3,1], index: 9, kind: input, shape index: {}]   ;;  %s2913_s8 = inlined_call_operand.vmem [shape: f32[3,256], index: 8, kind: input, shape index: {}]   ;;  %s2914_s10 = inlined_call_operand.vmem [shape: f32[16,64], index: 10, kind: input, shape index: {}]   ;;  %s2915_s11 = inlined_call_operand.vmem [shape: f32[3,1], index: 11, kind: input, shape index: {}]   ;;  %s2916_s12 = inlined_call_operand.vmem [shape: f32[3,1], index: 12, kind: input, shape index: {}]   ;;  %s2917_s13 = inlined_call_operand.vmem [shape: f32[2,3,64], index: 13, kind: output, shape index: {}]  }
   0x1   :  { %1713 = vset.pattern.permute.xlu2 %v1716_v0  ;;  %1712 = vset.pattern.permute.xlu1 %v1716_v0  ;;  %v81_v1 = vld [vmem:[%s2904_s3 + $0x20] sm:$0xff]  ;;  %v79_v2 = vld [vmem:[%s2904_s3 + $0x10] sm:$0xff]  ;;  %v73_v7 = vld [vmem:[%s2907_s2 + $0xe8] sm:$0xff]  ;;  %vm1544_vm3 = vcmask 518144  }
   0x2   :  { %v77_v3 = vld [vmem:[%s2904_s3] sm:$0xff]  ;;  %1711 = vset.pattern.permute.xlu0 %v1716_v0  ;;  %131 = vperm.xlu2 %1713, %v81_v1   ;;  %v513_v9 = vld [vmem:[%s2908_s4 + $0xf0] sm:$0xff]  ;;  %v82_v10 = vld [vmem:[%s2904_s3 + $0x28] sm:$0xff] }
   0x3   :  { %v76_v4 = vld [vmem:[%s2905_s0] sm:$0x7]  ;;  %121 = vperm.xlu1 %1712, %v79_v2   ;;  %111 = vperm.xlu0 %1711, %v77_v3   ;;  %v80_v11 = vld [vmem:[%s2904_s3 + $0x18] sm:$0xff]  ;;  %v78_v12 = vld [vmem:[%s2904_s3 + $0x8] sm:$0xff] }
   0x4   :  { %v547_v5 = vld [vmem:[%s2906_s1] sm:$0x7]  ;;  %1604 = vmatpush.msk.msra.mxu0 %vm366_vm0, %v76_v4  ;;  %1705 = vmatpush.msk.msra.mxu3 %vm366_vm0, %v76_v4  ;;  %v45_v13 = vld [vmem:[%s2907_s2 + $0x8] sm:$0xff]  ;;  %v74_v14 = vld [vmem:[%s2907_s2 + $0xf0] sm:$0xff] }
   0x5   :  { %v44_v6 = vld [vmem:[%s2907_s2] sm:$0xff]  ;;  %1637 = vmatpush.msk.msra.mxu1 %vm366_vm0, %v547_v5  ;;  %1706 = vmatpush.msk.msra.mxu2 %vm366_vm0, %v547_v5  ;;  %v484_v15 = vld [vmem:[%s2908_s4 + $0x8] sm:$0xff]  ;;  %v514_v16 = vld [vmem:[%s2908_s4 + $0xf8] sm:$0xff] }
   0x6   :  { %v483_v8 = vld [vmem:[%s2908_s4] sm:$0xff]  ;;  %1605 = vmatmul.msk.f32.vlgmr.msra.gmra.mxu0 %vm269_vm1, %v44_v6  ;;  %1634 = vmatmul.msk.f32.vlgmr.msra.gmra.mxu3 %vm269_vm1, %v73_v7  ;;  %v84_v18 = vld [vmem:[%s2904_s3 + $0x38] sm:$0xff]  ;;  %v83_v19 = vld [vmem:[%s2904_s3 + $0x30] sm:$0xff] }
   0x7   :  { %1638 = vmatmul.msk.f32.vlgmr.msra.gmra.mxu1 %vm269_vm1, %v483_v8  ;;  %1668 = vmatmul.msk.f32.vlgmr.msra.gmra.mxu2 %vm269_vm1, %v513_v9  ;;  %v85_v17 = vld [vmem:[%s2904_s3 + $0x40] sm:$0xff]  ;;  %v46_v20 = vld [vmem:[%s2907_s2 + $0x10] sm:$0xff]  ;;  %v75_v21 = vld [vmem:[%s2907_s2 + $0xf8] sm:$0xff] }
   0x8   :  { %1707 = vmatpush.msk.msrb.mxu3 %vm366_vm0, %v547_v5  ;;  %v485_v22 = vld [vmem:[%s2908_s4 + $0x10] sm:$0xff]  ;;  %v515_v23 = vld [vmem:[%s2908_s4 + $0x100] sm:$0xff]  ;;  %v88_v24 = vld [vmem:[%s2904_s3 + $0x58] sm:$0xff] }
   0x9   :  { %v87_v25 = vld [vmem:[%s2904_s3 + $0x50] sm:$0xff]  ;;  %v86_v26 = vld [vmem:[%s2904_s3 + $0x48] sm:$0xff]  ;;  %v47_v27 = vld [vmem:[%s2907_s2 + $0x18] sm:$0xff] }
   0xa   :  { %136 = vperm.xlu2 %1713, %v82_v10   ;;  %v532_v28 = vld [vmem:[%s2908_s4 + $0x188] sm:$0xff]  ;;  %v486_v29 = vld [vmem:[%s2908_s4 + $0x18] sm:$0xff]  ;;  %v91_v31 = vld [vmem:[%s2904_s3 + $0x70] sm:$0xff] }
   0xb   :  { %126 = vperm.xlu1 %1712, %v80_v11   ;;  %116 = vperm.xlu0 %1711, %v78_v12   ;;  %v516_v30 = vld [vmem:[%s2908_s4 + $0x108] sm:$0xff]  ;;  %v89_v33 = vld [vmem:[%s2904_s3 + $0x60] sm:$0xff]  ;;  %v533_v35 = vld [vmem:[%s2908_s4 + $0x190] sm:$0xff] }
   0xc   :  { %v90_v32 = vld [vmem:[%s2904_s3 + $0x68] sm:$0xff]  ;;  %v48_v34 = vld [vmem:[%s2907_s2 + $0x20] sm:$0xff]  ;;  %v517_v37 = vld [vmem:[%s2908_s4 + $0x110] sm:$0xff] }
   0xd   :  { %v487_v36 = vld [vmem:[%s2908_s4 + $0x20] sm:$0xff]  ;;  %v579_v38 = vld [vmem:[%s2909_s5 + $0xf8] sm:$0xff]  ;;  %v562_v39 = vld [vmem:[%s2909_s5 + $0x70] sm:$0xff] }
   0xe   :  { %1606 = vmatmul.msk.f32.gmra.mxu0 %vm269_vm1, %v45_v13  ;;  %1635 = vmatmul.msk.f32.gmra.mxu3 %vm269_vm1, %v74_v14  ;;  %v563_v40 = vld [vmem:[%s2909_s5 + $0x78] sm:$0xff]  ;;  %v49_v41 = vld [vmem:[%s2907_s2 + $0x28] sm:$0xff]  ;;  %v560_v45 = vld [vmem:[%s2909_s5 + $0x60] sm:$0xff] }
   0xf   :  { %1639 = vmatmul.msk.f32.gmra.mxu1 %vm269_vm1, %v484_v15  ;;  %1669 = vmatmul.msk.f32.gmra.mxu2 %vm269_vm1, %v514_v16  ;;  %v534_v42 = vld [vmem:[%s2908_s4 + $0x198] sm:$0xff]  ;;  %v488_v43 = vld [vmem:[%s2908_s4 + $0x28] sm:$0xff]  ;;  %v578_v46 = vld [vmem:[%s2909_s5 + $0xf0] sm:$0xff] }
  0x10   :  { %v518_v44 = vld [vmem:[%s2908_s4 + $0x118] sm:$0xff]  ;;  %v561_v47 = vld [vmem:[%s2909_s5 + $0x68] sm:$0xff]  ;;  %v50_v48 = vld [vmem:[%s2907_s2 + $0x30] sm:$0xff] }
  0x11   :  { %v535_v49 = vld [vmem:[%s2908_s4 + $0x1a0] sm:$0xff]  ;;  %v489_v50 = vld [vmem:[%s2908_s4 + $0x30] sm:$0xff]  ;;  %v559_v53 = vld [vmem:[%s2909_s5 + $0x58] sm:$0xff] }
  0x12   :  { %151 = vperm.xlu2 %1713, %v85_v17   ;;  %v519_v51 = vld [vmem:[%s2908_s4 + $0x120] sm:$0xff]  ;;  %v577_v54 = vld [vmem:[%s2909_s5 + $0xe8] sm:$0xff]  ;;  %v51_v55 = vld [vmem:[%s2907_s2 + $0x38] sm:$0xff] }
  0x13   :  { %146 = vperm.xlu1 %1712, %v84_v18   ;;  %141 = vperm.xlu0 %1711, %v83_v19   ;;  %v576_v52 = vld [vmem:[%s2909_s5 + $0xe0] sm:$0xff]  ;;  %v536_v56 = vld [vmem:[%s2908_s4 + $0x1a8] sm:$0xff]  ;;  %v490_v57 = vld [vmem:[%s2908_s4 + $0x38] sm:$0xff] }
  0x14   :  { %v520_v58 = vld [vmem:[%s2908_s4 + $0x128] sm:$0xff]  ;;  %v575_v59 = vld [vmem:[%s2909_s5 + $0xd8] sm:$0xff]  ;;  %v558_v60 = vld [vmem:[%s2909_s5 + $0x50] sm:$0xff] }
  0x15   :  { %v595_v61 = vld [vmem:[%s2909_s5 + $0x178] sm:$0xff]  ;;  %v52_v62 = vld [vmem:[%s2907_s2 + $0x40] sm:$0xff]  ;;  %v537_v63 = vld [vmem:[%s2908_s4 + $0x1b0] sm:$0xff] }
  0x16   :  { %1607 = vmatmul.msk.f32.gmra.mxu0 %vm269_vm1, %v46_v20  ;;  %1636 = vmatmul.msk.f32.gmra.mxu3 %vm269_vm1, %v75_v21  ;;  %v491_v0 = vld [vmem:[%s2908_s4 + $0x40] sm:$0xff]  ;;  %v521_v1 = vld [vmem:[%s2908_s4 + $0x130] sm:$0xff]  ;;  %v557_v2 = vld [vmem:[%s2909_s5 + $0x48] sm:$0xff] }
  0x17   :  { %1640 = vmatmul.msk.f32.gmra.mxu1 %vm269_vm1, %v485_v22  ;;  %1670 = vmatmul.msk.f32.gmra.mxu2 %vm269_vm1, %v515_v23  ;;  %v611_v3 = vld [vmem:[%s2909_s5 + $0x1f8] sm:$0xff]  ;;  %v594_v4 = vld [vmem:[%s2909_s5 + $0x170] sm:$0xff]  ;;  %v53_v5 = vld [vmem:[%s2907_s2 + $0x48] sm:$0xff] }
  0x18   :  { %v538_v6 = vld [vmem:[%s2908_s4 + $0x1b8] sm:$0xff]  ;;  %v492_v7 = vld [vmem:[%s2908_s4 + $0x48] sm:$0xff]  ;;  %v610_v9 = vld [vmem:[%s2909_s5 + $0x1f0] sm:$0xff] }
  0x19   :  { %v522_v8 = vld [vmem:[%s2908_s4 + $0x138] sm:$0xff]  ;;  %v593_v10 = vld [vmem:[%s2909_s5 + $0x168] sm:$0xff]  ;;  %v574_v11 = vld [vmem:[%s2909_s5 + $0xd0] sm:$0xff] }
  0x1a   :  { %166 = vperm.xlu2 %1713, %v88_v24   ;;  %v54_v12 = vld [vmem:[%s2907_s2 + $0x50] sm:$0xff]  ;;  %v539_v13 = vld [vmem:[%s2908_s4 + $0x1c0] sm:$0xff]  ;;  %v573_v17 = vld [vmem:[%s2909_s5 + $0xc8] sm:$0xff] }
  0x1b   :  { %161 = vperm.xlu1 %1712, %v87_v25   ;;  %156 = vperm.xlu0 %1711, %v86_v26   ;;  %v493_v14 = vld [vmem:[%s2908_s4 + $0x50] sm:$0xff]  ;;  %v523_v15 = vld [vmem:[%s2908_s4 + $0x140] sm:$0xff]  ;;  %v55_v19 = vld [vmem:[%s2907_s2 + $0x58] sm:$0xff] }
  0x1c   :  { %v592_v16 = vld [vmem:[%s2909_s5 + $0x160] sm:$0xff]  ;;  %v540_v20 = vld [vmem:[%s2908_s4 + $0x1c8] sm:$0xff]  ;;  %v494_v21 = vld [vmem:[%s2908_s4 + $0x58] sm:$0xff] }
  0x1d   :  { %v556_v18 = vld [vmem:[%s2909_s5 + $0x40] sm:$0xff]  ;;  %v524_v22 = vld [vmem:[%s2908_s4 + $0x148] sm:$0xff]  ;;  %v555_v25 = vld [vmem:[%s2909_s5 + $0x38] sm:$0xff] }
  0x1e   :  { %1608 = vmatmul.msk.f32.gmra.mxu0 %vm269_vm1, %v47_v27  ;;  %1687 = vmatmul.msk.f32.vlgmr.msrb.gmra.mxu3 %vm269_vm1, %v532_v28  ;;  %v572_v24 = vld [vmem:[%s2909_s5 + $0xc0] sm:$0xff]  ;;  %v609_v26 = vld [vmem:[%s2909_s5 + $0x1e8] sm:$0xff]  ;;  %v541_v28 = vld [vmem:[%s2908_s4 + $0x1d0] sm:$0xff] }
  0x1f   :  { %1641 = vmatmul.msk.f32.gmra.mxu1 %vm269_vm1, %v486_v29  ;;  %1671 = vmatmul.msk.f32.gmra.mxu2 %vm269_vm1, %v516_v30  ;;  %v56_v27 = vld [vmem:[%s2907_s2 + $0x60] sm:$0xff]  ;;  %v525_v30 = vld [vmem:[%s2908_s4 + $0x150] sm:$0xff] }
  0x20   :  { %v495_v29 = vld [vmem:[%s2908_s4 + $0x60] sm:$0xff] }
  0x22   :  { %181 = vperm.xlu2 %1713, %v91_v31  }
  0x23   :  { %176 = vperm.xlu1 %1712, %v90_v32   ;;  %171 = vperm.xlu0 %1711, %v89_v33   ;;  %v554_v32 = vld [vmem:[%s2909_s5 + $0x30] sm:$0xff]  ;;  %v608_v33 = vld [vmem:[%s2909_s5 + $0x1e0] sm:$0xff] }
  0x26   :  { %1609 = vmatmul.msk.f32.gmra.mxu0 %vm269_vm1, %v48_v34  ;;  %1688 = vmatmul.msk.f32.gmra.mxu3 %vm269_vm1, %v533_v35  ;;  %v591_v34 = vld [vmem:[%s2909_s5 + $0x158] sm:$0xff]  ;;  %v57_v35 = vld [vmem:[%s2907_s2 + $0x68] sm:$0xff] }
  0x27   :  { %1642 = vmatmul.msk.f32.gmra.mxu1 %vm269_vm1, %v487_v36  ;;  %1672 = vmatmul.msk.f32.gmra.mxu2 %vm269_vm1, %v517_v37  ;;  %v542_v36 = vld [vmem:[%s2908_s4 + $0x1d8] sm:$0xff]  ;;  %v496_v37 = vld [vmem:[%s2908_s4 + $0x68] sm:$0xff] }
  0x2a   :  { %769 = vperm.xlu2 %1713, %v579_v38   ;;  %v526_v38 = vld [vmem:[%s2908_s4 + $0x158] sm:$0xff] }
  0x2b   :  { %684 = vperm.xlu1 %1712, %v562_v39   ;;  %689 = vperm.xlu0 %1711, %v563_v40   ;;  %v607_v40 = vld [vmem:[%s2909_s5 + $0x1d8] sm:$0xff] }
  0x2e   :  { %1610 = vmatmul.msk.f32.gmra.mxu0 %vm269_vm1, %v49_v41  ;;  %1689 = vmatmul.msk.f32.gmra.mxu3 %vm269_vm1, %v534_v42  ;;  %v590_v41 = vld [vmem:[%s2909_s5 + $0x150] sm:$0xff]  ;;  %v571_v42 = vld [vmem:[%s2909_s5 + $0xb8] sm:$0xff] }
  0x2f   :  { %1643 = vmatmul.msk.f32.gmra.mxu1 %vm269_vm1, %v488_v43  ;;  %1673 = vmatmul.msk.f32.gmra.mxu2 %vm269_vm1, %v518_v44  ;;  %v58_v43 = vld [vmem:[%s2907_s2 + $0x70] sm:$0xff]  ;;  %v543_v44 = vld [vmem:[%s2908_s4 + $0x1e0] sm:$0xff] }
  0x32   :  { %674 = vperm.xlu2 %1713, %v560_v45   ;;  %v497_v45 = vld [vmem:[%s2908_s4 + $0x70] sm:$0xff] }
  0x33   :  { %764 = vperm.xlu1 %1712, %v578_v46   ;;  %679 = vperm.xlu0 %1711, %v561_v47   ;;  %v527_v46 = vld [vmem:[%s2908_s4 + $0x160] sm:$0xff] }
  0x36   :  { %1611 = vmatmul.msk.f32.gmra.mxu0 %vm269_vm1, %v50_v48  ;;  %1690 = vmatmul.msk.f32.gmra.mxu3 %vm269_vm1, %v535_v49 }
  0x37   :  { %1644 = vmatmul.msk.f32.gmra.mxu1 %vm269_vm1, %v489_v50  ;;  %1674 = vmatmul.msk.f32.gmra.mxu2 %vm269_vm1, %v519_v51  ;;  %v589_v50 = vld [vmem:[%s2909_s5 + $0x148] sm:$0xff]  ;;  %v570_v51 = vld [vmem:[%s2909_s5 + $0xb0] sm:$0xff] }
  0x3a   :  { %754 = vperm.xlu2 %1713, %v576_v52   ;;  %v553_v52 = vld [vmem:[%s2909_s5 + $0x28] sm:$0xff] }
  0x3b   :  { %669 = vperm.xlu1 %1712, %v559_v53   ;;  %759 = vperm.xlu0 %1711, %v577_v54   ;;  %v59_v53 = vld [vmem:[%s2907_s2 + $0x78] sm:$0xff]  ;;  %v544_v54 = vld [vmem:[%s2908_s4 + $0x1e8] sm:$0xff] }
  0x3e   :  { %1612 = vmatmul.msk.f32.gmra.mxu0 %vm269_vm1, %v51_v55  ;;  %1691 = vmatmul.msk.f32.gmra.mxu3 %vm269_vm1, %v536_v56  ;;  %v498_v55 = vld [vmem:[%s2908_s4 + $0x78] sm:$0xff]  ;;  %v528_v56 = vld [vmem:[%s2908_s4 + $0x168] sm:$0xff] }
  0x3f   :  { %1645 = vmatmul.msk.f32.gmra.mxu1 %vm269_vm1, %v490_v57  ;;  %1675 = vmatmul.msk.f32.gmra.mxu2 %vm269_vm1, %v520_v58 }
  0x42   :  { %749 = vperm.xlu2 %1713, %v575_v59  }
  0x43   :  { %664 = vperm.xlu1 %1712, %v558_v60   ;;  %849 = vperm.xlu0 %1711, %v595_v61   ;;  %v569_v60 = vld [vmem:[%s2909_s5 + $0xa8] sm:$0xff]  ;;  %v552_v61 = vld [vmem:[%s2909_s5 + $0x20] sm:$0xff] }
  0x46   :  { %1613 = vmatmul.msk.f32.gmra.mxu0 %vm269_vm1, %v52_v62  ;;  %1692 = vmatmul.msk.f32.gmra.mxu3 %vm269_vm1, %v537_v63  ;;  %v606_v62 = vld [vmem:[%s2909_s5 + $0x1d0] sm:$0xff] }
  0x47   :  { %1646 = vmatmul.msk.f32.gmra.mxu1 %vm269_vm1, %v491_v0  ;;  %1676 = vmatmul.msk.f32.gmra.mxu2 %vm269_vm1, %v521_v1  ;;  %v60_v0 = vld [vmem:[%s2907_s2 + $0x80] sm:$0xff]  ;;  %v545_v1 = vld [vmem:[%s2908_s4 + $0x1f0] sm:$0xff] }
  0x4a   :  { %659 = vperm.xlu2 %1713, %v557_v2  }
  0x4b   :  { %929 = vperm.xlu1 %1712, %v611_v3   ;;  %844 = vperm.xlu0 %1711, %v594_v4   ;;  %v499_v3 = vld [vmem:[%s2908_s4 + $0x80] sm:$0xff]  ;;  %v529_v4 = vld [vmem:[%s2908_s4 + $0x170] sm:$0xff] }
  0x4e   :  { %1614 = vmatmul.msk.f32.gmra.mxu0 %vm269_vm1, %v53_v5  ;;  %1693 = vmatmul.msk.f32.gmra.mxu3 %vm269_vm1, %v538_v6 }
  0x4f   :  { %1647 = vmatmul.msk.f32.gmra.mxu1 %vm269_vm1, %v492_v7  ;;  %1677 = vmatmul.msk.f32.gmra.mxu2 %vm269_vm1, %v522_v8  ;;  %v551_v8 = vld [vmem:[%s2909_s5 + $0x18] sm:$0xff] }
  0x52   :  { %924 = vperm.xlu2 %1713, %v610_v9   ;;  %v605_v9 = vld [vmem:[%s2909_s5 + $0x1c8] sm:$0xff] }
  0x53   :  { %839 = vperm.xlu1 %1712, %v593_v10   ;;  %744 = vperm.xlu0 %1711, %v574_v11   ;;  %v588_v10 = vld [vmem:[%s2909_s5 + $0x140] sm:$0xff] }
  0x56   :  { %1615 = vmatmul.msk.f32.gmra.mxu0 %vm269_vm1, %v54_v12  ;;  %1694 = vmatmul.msk.f32.gmra.mxu3 %vm269_vm1, %v539_v13 }
  0x57   :  { %1648 = vmatmul.msk.f32.gmra.mxu1 %vm269_vm1, %v493_v14  ;;  %1678 = vmatmul.msk.f32.gmra.mxu2 %vm269_vm1, %v523_v15  ;;  %v61_v14 = vld [vmem:[%s2907_s2 + $0x88] sm:$0xff]  ;;  %v546_v15 = vld [vmem:[%s2908_s4 + $0x1f8] sm:$0xff] }
  0x5a   :  { %834 = vperm.xlu2 %1713, %v592_v16  }
  0x5b   :  { %739 = vperm.xlu1 %1712, %v573_v17   ;;  %654 = vperm.xlu0 %1711, %v556_v18   ;;  %v500_v17 = vld [vmem:[%s2908_s4 + $0x88] sm:$0xff]  ;;  %v530_v18 = vld [vmem:[%s2908_s4 + $0x178] sm:$0xff] }
  0x5c   :  { %v2096_v23 = vpop.permute.xlu2 %131 }
  0x5d   :  { %2918 = vst [vmem:[#allocation2_spill] sm:$0xff] %v2096_v23 }
  0x5e   :  { %1616 = vmatmul.msk.f32.gmra.mxu0 %vm269_vm1, %v55_v19  ;;  %1695 = vmatmul.msk.f32.gmra.mxu3 %vm269_vm1, %v540_v20 }
  0x5f   :  { %1649 = vmatmul.msk.f32.gmra.mxu1 %vm269_vm1, %v494_v21  ;;  %1679 = vmatmul.msk.f32.gmra.mxu2 %vm269_vm1, %v524_v22  ;;  %v604_v22 = vld [vmem:[%s2909_s5 + $0x1c0] sm:$0xff] }
  0x62   :  { %734 = vperm.xlu2 %1713, %v572_v24   ;;  %v587_v24 = vld [vmem:[%s2909_s5 + $0x138] sm:$0xff] }
  0x63   :  { %649 = vperm.xlu1 %1712, %v555_v25   ;;  %919 = vperm.xlu0 %1711, %v609_v26   ;;  %v568_v25 = vld [vmem:[%s2909_s5 + $0xa0] sm:$0xff] }
  0x64   :  { %v2123_v31 = vpop.permute.xlu2 %136 }
  0x66   :  { %1617 = vmatmul.msk.f32.gmra.mxu0 %vm269_vm1, %v56_v27  ;;  %1696 = vmatmul.msk.f32.gmra.mxu3 %vm269_vm1, %v541_v28 }
  0x67   :  { %1650 = vmatmul.msk.f32.gmra.mxu1 %vm269_vm1, %v495_v29  ;;  %1680 = vmatmul.msk.f32.gmra.mxu2 %vm269_vm1, %v525_v30  ;;  %v62_v30 = vld [vmem:[%s2907_s2 + $0x90] sm:$0xff] }
  0x6a   :  { %644 = vperm.xlu2 %1713, %v554_v32  }
  0x6b   :  { %914 = vperm.xlu1 %1712, %v608_v33   ;;  %829 = vperm.xlu0 %1711, %v591_v34   ;;  %v501_v33 = vld [vmem:[%s2908_s4 + $0x90] sm:$0xff] }
  0x6c   :  { %v2150_v39 = vpop.permute.xlu2 %151 }
  0x6d   :  { %2919 = vst [vmem:[#allocation3_spill] sm:$0xff] %v2150_v39 }
  0x6e   :  { %1618 = vmatmul.msk.f32.gmra.mxu0 %vm269_vm1, %v57_v35  ;;  %1697 = vmatmul.msk.f32.gmra.mxu3 %vm269_vm1, %v542_v36 }
  0x6f   :  { %1651 = vmatmul.msk.f32.gmra.mxu1 %vm269_vm1, %v496_v37  ;;  %1681 = vmatmul.msk.f32.gmra.mxu2 %vm269_vm1, %v526_v38  ;;  %v586_v37 = vld [vmem:[%s2909_s5 + $0x130] sm:$0xff]  ;;  %v567_v38 = vld [vmem:[%s2909_s5 + $0x98] sm:$0xff] }
  0x72   :  { %909 = vperm.xlu2 %1713, %v607_v40   ;;  %v550_v40 = vld [vmem:[%s2909_s5 + $0x10] sm:$0xff] }
  0x73   :  { %824 = vperm.xlu1 %1712, %v590_v41   ;;  %729 = vperm.xlu0 %1711, %v571_v42  }
  0x74   :  { %v2177_v47 = vpop.permute.xlu2 %166 }
  0x75   :  { %v2179_v48 = vpop.permute.xlu1 %121  ;;  %v2181_v49 = vpop.permute.xlu0 %111 }
  0x76   :  { %2920 = vst [vmem:[#allocation4_spill] sm:$0xff] %v2179_v48  ;;  %1619 = vmatmul.msk.f32.gmra.mxu0 %vm269_vm1, %v58_v43  ;;  %1698 = vmatmul.msk.f32.gmra.mxu3 %vm269_vm1, %v543_v44  ;;  %v63_v44 = vld [vmem:[%s2907_s2 + $0x98] sm:$0xff] }
  0x77   :  { %2921 = vst [vmem:[#allocation5_spill] sm:$0xff] %v2181_v49  ;;  %1652 = vmatmul.msk.f32.gmra.mxu1 %vm269_vm1, %v497_v45  ;;  %1682 = vmatmul.msk.f32.gmra.mxu2 %vm269_vm1, %v527_v46  ;;  %v502_v46 = vld [vmem:[%s2908_s4 + $0x98] sm:$0xff]  ;;  %v511_v49 = vld [vmem:[%s2908_s4 + $0xe0] sm:$0xff] }
  0x7a   :  { %819 = vperm.xlu2 %1713, %v589_v50  }
  0x7b   :  { %724 = vperm.xlu1 %1712, %v570_v51   ;;  %639 = vperm.xlu0 %1711, %v553_v52  }
  0x7c   :  { %v2208_v57 = vpop.permute.xlu2 %181 }
  0x7d   :  { %v2210_v58 = vpop.permute.xlu1 %126  ;;  %v2212_v59 = vpop.permute.xlu0 %116 }
  0x7e   :  { %2922 = vst [vmem:[#allocation6_spill] sm:$0xff] %v2210_v58  ;;  %1620 = vmatmul.msk.f32.gmra.mxu0 %vm269_vm1, %v59_v53  ;;  %1699 = vmatmul.msk.f32.gmra.mxu3 %vm269_vm1, %v544_v54  ;;  %v566_v53 = vld [vmem:[%s2909_s5 + $0x90] sm:$0xff]  ;;  %v549_v54 = vld [vmem:[%s2909_s5 + $0x8] sm:$0xff] }
  0x7f   :  { %2923 = vst [vmem:[#allocation7_spill] sm:$0xff] %v2212_v59  ;;  %1653 = vmatmul.msk.f32.gmra.mxu1 %vm269_vm1, %v498_v55  ;;  %1683 = vmatmul.msk.f32.gmra.mxu2 %vm269_vm1, %v528_v56  ;;  %v603_v55 = vld [vmem:[%s2909_s5 + $0x1b8] sm:$0xff] }
  0x82   :  { %719 = vperm.xlu2 %1713, %v569_v60  }
  0x83   :  { %v2227_v63 = vpop.f32.mrf.mxu0  ;;  %634 = vperm.xlu1 %1712, %v552_v61   ;;  %904 = vperm.xlu0 %1711, %v606_v62   ;;  %v64_v62 = vld [vmem:[%s2907_s2 + $0xa0] sm:$0xff] }
  0x84   :  { %2924 = vst [vmem:[#allocation8_spill] sm:$0xff] %v2227_v63  ;;  %v2235_v2 = vpop.f32.mrf.mxu1  ;;  %v770_v5 = vpop.permute.xlu2 %769 }
  0x85   :  { %v2243_v6 = vpop.permute.xlu1 %146  ;;  %v2245_v7 = vpop.permute.xlu0 %141 }
  0x86   :  { %1621 = vmatmul.msk.f32.gmra.mxu0 %vm269_vm1, %v60_v0  ;;  %1700 = vmatmul.msk.f32.gmra.mxu3 %vm269_vm1, %v545_v1  ;;  %v503_v1 = vld [vmem:[%s2908_s4 + $0xa0] sm:$0xff] }
  0x87   :  { %1654 = vmatmul.msk.f32.gmra.mxu1 %vm269_vm1, %v499_v3  ;;  %1684 = vmatmul.msk.f32.gmra.mxu2 %vm269_vm1, %v529_v4  ;;  %v531_v4 = vld [vmem:[%s2908_s4 + $0x180] sm:$0xff] }
  0x89   :  { %v2260_v11 = vpop.f32.mrf.mxu3 }
  0x8a   :  { %2925 = vst [vmem:[#allocation9_spill] sm:$0xff] %v2260_v11  ;;  %v2262_v12 = vpop.f32.mrf.mxu2  ;;  %629 = vperm.xlu2 %1713, %v551_v8  }
  0x8b   :  { %v2264_v13 = vpop.f32.mrf.mxu0  ;;  %899 = vperm.xlu1 %1712, %v605_v9   ;;  %814 = vperm.xlu0 %1711, %v588_v10   ;;  %v548_v10 = vld [vmem:[%s2909_s5] sm:$0xff] }
  0x8c   :  { %2926 = vst [vmem:[#allocation10_spill] sm:$0xff] %v2264_v13  ;;  %v2272_v16 = vpop.f32.mrf.mxu1  ;;  %v2280_v19 = vpop.permute.xlu2 %674 }
  0x8d   :  { %v2282_v20 = vpop.permute.xlu1 %161  ;;  %v2284_v21 = vpop.permute.xlu0 %156 }
  0x8e   :  { %2927 = vst [vmem:[#allocation11_spill] sm:$0xff] %v2282_v20  ;;  %1622 = vmatmul.msk.f32.gmra.mxu0 %vm269_vm1, %v61_v14  ;;  %1701 = vmatmul.msk.f32.gmra.mxu3 %vm269_vm1, %v546_v15  ;;  %v602_v14 = vld [vmem:[%s2909_s5 + $0x1b0] sm:$0xff]  ;;  %v585_v15 = vld [vmem:[%s2909_s5 + $0x128] sm:$0xff] }
  0x8f   :  { %2928 = vst [vmem:[#allocation12_spill] sm:$0xff] %v2284_v21  ;;  %1655 = vmatmul.msk.f32.gmra.mxu1 %vm269_vm1, %v500_v17  ;;  %1685 = vmatmul.msk.f32.gmra.mxu2 %vm269_vm1, %v530_v18  ;;  %v1438_v21 = vld [vmem:[%s2912_s9] sm:$0x7] }
  0x91   :  { %v2299_v26 = vpop.f32.mrf.mxu3 }
  0x92   :  { %2929 = vst [vmem:[#allocation13_spill] sm:$0xff] %v2299_v26  ;;  %v1237_v27 = vpop.f32.mrf.mxu2  ;;  %894 = vperm.xlu2 %1713, %v604_v22   ;;  %v65_v22 = vld [vmem:[%s2907_s2 + $0xa8] sm:$0xff] }
  0x93   :  { %v1238_v28 = vadd.f32 %v1237_v27, %v770_v5  ;;  %v2301_v29 = vpop.f32.mrf.mxu0  ;;  %809 = vperm.xlu1 %1712, %v587_v24   ;;  %714 = vperm.xlu0 %1711, %v568_v25   ;;  %v504_v27 = vld [vmem:[%s2908_s4 + $0xa8] sm:$0xff] }
  0x94   :  { %2930 = vst [vmem:[#allocation14_spill] sm:$0xff] %v2301_v29  ;;  %v2306_v32 = vpop.f32.mrf.mxu1  ;;  %v2311_v34 = vpop.permute.xlu2 %754 }
  0x95   :  { %2931 = vst [vmem:[#allocation15_spill] sm:$0xff] %v2311_v34  ;;  %v2313_v35 = vpop.permute.xlu1 %176  ;;  %v2315_v36 = vpop.permute.xlu0 %171  ;;  %1377 = vmatpush.msra.mxu3 %v1238_v28 }
  0x96   :  { %1623 = vmatmul.msk.f32.gmra.mxu0 %vm269_vm1, %v62_v30 }
  0x97   :  { %1656 = vmatmul.msk.f32.gmra.mxu1 %vm269_vm1, %v501_v33  ;;  %1686 = vmatmul.msk.f32.gmra.mxu2 %vm269_vm1, %v531_v4 }
  0x99   :  { %v2328_v41 = vpop.f32.mrf.mxu3 }
  0x9a   :  { %2932 = vst [vmem:[#allocation16_spill] sm:$0xff] %v2328_v41  ;;  %v2330_v42 = vpop.f32.mrf.mxu2  ;;  %804 = vperm.xlu2 %1713, %v586_v37   ;;  %v584_v37 = vld [vmem:[%s2909_s5 + $0x120] sm:$0xff] }
  0x9b   :  { %v2332_v43 = vpop.f32.mrf.mxu0  ;;  %709 = vperm.xlu1 %1712, %v567_v38   ;;  %624 = vperm.xlu0 %1711, %v550_v40   ;;  %v565_v38 = vld [vmem:[%s2909_s5 + $0x88] sm:$0xff] }
  0x9c   :  { %2933 = vst [vmem:[#allocation17_spill] sm:$0xff] %v2332_v43  ;;  %v2337_v45 = vpop.f32.mrf.mxu1  ;;  %v2342_v50 = vpop.permute.xlu2 %749 }
  0x9d   :  { %2934 = vst [vmem:[#allocation18_spill] sm:$0xff] %v2342_v50  ;;  %v2344_v51 = vpop.permute.xlu1 %684  ;;  %v2346_v52 = vpop.permute.xlu0 %689 }
  0x9e   :  { %1624 = vmatmul.msk.f32.gmra.mxu0 %vm269_vm1, %v63_v44 }
  0x9f   :  { %1657 = vmatmul.msk.f32.gmra.mxu1 %vm269_vm1, %v502_v46  ;;  %v66_v46 = vld [vmem:[%s2907_s2 + $0xb0] sm:$0xff] }
  0xa1   :  { %v2359_v56 = vpop.f32.mrf.mxu3 }
  0xa2   :  { %2935 = vst [vmem:[#allocation19_spill] sm:$0xff] %v2359_v56  ;;  %v2361_v60 = vpop.f32.mrf.mxu2  ;;  %704 = vperm.xlu2 %1713, %v566_v53  }
  0xa3   :  { %v2363_v61 = vpop.f32.mrf.mxu0  ;;  %619 = vperm.xlu1 %1712, %v549_v54   ;;  %889 = vperm.xlu0 %1711, %v603_v55   ;;  %v505_v55 = vld [vmem:[%s2908_s4 + $0xb0] sm:$0xff] }
  0xa4   :  { %2936 = vst [vmem:[#allocation20_spill] sm:$0xff] %v2363_v61  ;;  %v2368_v0 = vpop.f32.mrf.mxu1  ;;  %v2373_v3 = vpop.permute.xlu2 %659 }
  0xa5   :  { %v765_v5 = vpop.permute.xlu1 %764  ;;  %v2378_v8 = vpop.permute.xlu0 %679 }
  0xa6   :  { %1625 = vmatmul.msk.f32.gmra.mxu0 %vm269_vm1, %v64_v62  ;;  %v1235_v9 = vadd.f32 %v2262_v12, %v765_v5 }
  0xa7   :  { %1658 = vmatmul.msk.f32.gmra.mxu1 %vm269_vm1, %v503_v1 }
  0xa8   :  { %1378 = vmatpush.msra.mxu3 %v1235_v9  ;;  %v583_v9 = vld [vmem:[%s2909_s5 + $0x118] sm:$0xff] }
  0xa9   :  { %v2395_v18 = vpop.f32.mrf.mxu3 }
  0xaa   :  { %v2393_v17 = vpop.f32.mrf.mxu2  ;;  %614 = vperm.xlu2 %1713, %v548_v10   ;;  %2937 = vst [vmem:[#allocation21_spill] sm:$0xff] %v2395_v18  ;;  %v564_v10 = vld [vmem:[%s2909_s5 + $0x80] sm:$0xff]  ;;  %v508_v18 = vld [vmem:[%s2908_s4 + $0xc8] sm:$0xff] }
  0xab   :  { %v402_v12 = vpop.f32.mrf.mxu0  ;;  %884 = vperm.xlu1 %1712, %v602_v14   ;;  %799 = vperm.xlu0 %1711, %v585_v15  }
  0xac   :  { %v2401_v24 = vadd.f32 %v402_v12, %v2123_v31  ;;  %v2403_v25 = vpop.f32.mrf.mxu1  ;;  %v2408_v28 = vpop.permute.xlu2 %924  ;;  %v601_v31 = vld [vmem:[%s2909_s5 + $0x1a8] sm:$0xff]  ;;  %v67_v12 = vld [vmem:[%s2907_s2 + $0xb8] sm:$0xff] }
  0xad   :  { %2939 = vst [vmem:[#allocation23_spill] sm:$0xff] %v2408_v28  ;;  %v2410_v30 = vpop.permute.xlu1 %669  ;;  %v2412_v33 = vpop.permute.xlu0 %759 }
  0xae   :  { %2938 = vst [vmem:[#allocation22_spill] sm:$0xff] %v2401_v24  ;;  %1626 = vmatmul.msk.f32.gmra.mxu0 %vm269_vm1, %v65_v22 }
  0xaf   :  { %2940 = vst [vmem:[#allocation24_spill] sm:$0xff] %v2412_v33  ;;  %1659 = vmatmul.msk.f32.gmra.mxu1 %vm269_vm1, %v504_v27 }
  0xb1   :  { %v2445_v5 = vpop.f32.mrf.mxu3 }
  0xb2   :  { %v2425_v40 = vpop.f32.mrf.mxu2  ;;  %879 = vperm.xlu2 %1713, %v601_v31   ;;  %2942 = vst [vmem:[#allocation26_spill] sm:$0xff] %v2445_v5  ;;  %v506_v31 = vld [vmem:[%s2908_s4 + $0xb8] sm:$0xff] }
  0xb3   :  { %v405_v44 = vpop.f32.mrf.mxu0  ;;  %794 = vperm.xlu1 %1712, %v584_v37   ;;  %699 = vperm.xlu0 %1711, %v565_v38  }
  0xb4   :  { %v2431_v53 = vadd.f32 %v405_v44, %v2245_v7  ;;  %v2433_v54 = vpop.f32.mrf.mxu1  ;;  %v2438_v62 = vpop.permute.xlu2 %834  ;;  %v600_v7 = vld [vmem:[%s2909_s5 + $0x1a0] sm:$0xff] }
  0xb5   :  { %v2440_v1 = vpop.permute.xlu1 %664  ;;  %v2442_v4 = vpop.permute.xlu0 %849 }
  0xb6   :  { %2941 = vst [vmem:[#allocation25_spill] sm:$0xff] %v2431_v53  ;;  %1627 = vmatmul.msk.f32.gmra.mxu0 %vm269_vm1, %v66_v46  ;;  %v599_v46 = vld [vmem:[%s2909_s5 + $0x198] sm:$0xff]  ;;  %v1336_v53 = vld [vmem:[%s2910_s6] sm:$0x77] }
  0xb7   :  { %1660 = vmatmul.msk.f32.gmra.mxu1 %vm269_vm1, %v505_v55  ;;  %v582_v55 = vld [vmem:[%s2909_s5 + $0x110] sm:$0xff]  ;;  %1346 = vst [vmem:[#allocation1] ss:$2 sm:$0xff] %v1336_v53 }
  0xba   :  { %v2457_v14 = vpop.f32.mrf.mxu2  ;;  %874 = vperm.xlu2 %1713, %v600_v7   ;;  %v2487_v7 = vpop.f32.mrf.mxu3 }
  0xbb   :  { %v408_v15 = vpop.f32.mrf.mxu0  ;;  %789 = vperm.xlu1 %1712, %v583_v9   ;;  %694 = vperm.xlu0 %1711, %v564_v10   ;;  %2946 = vst [vmem:[#allocation30_spill] sm:$0xff] %v2487_v7  ;;  %v68_v10 = vld [vmem:[%s2907_s2 + $0xc0] sm:$0xff] }
  0xbc   :  { %v2463_v22 = vadd.f32 %v408_v15, %v2243_v6  ;;  %v2465_v27 = vpop.f32.mrf.mxu1  ;;  %v2470_v37 = vpop.permute.xlu2 %734  ;;  %v581_v6 = vld [vmem:[%s2909_s5 + $0x108] sm:$0xff] }
  0xbd   :  { %2944 = vst [vmem:[#allocation28_spill] sm:$0xff] %v2470_v37  ;;  %v2472_v38 = vpop.permute.xlu1 %929  ;;  %v2474_v44 = vpop.permute.xlu0 %844 }
  0xbe   :  { %2943 = vst [vmem:[#allocation27_spill] sm:$0xff] %v2463_v22  ;;  %1628 = vmatmul.msk.f32.gmra.mxu0 %vm269_vm1, %v67_v12  ;;  %v507_v12 = vld [vmem:[%s2908_s4 + $0xc0] sm:$0xff]  ;;  %v94_v22 = vld [vmem:[%s2904_s3 + $0x88] sm:$0xff] }
  0xbf   :  { %2945 = vst [vmem:[#allocation29_spill] sm:$0xff] %v2472_v38  ;;  %1661 = vmatmul.msk.f32.gmra.mxu1 %vm269_vm1, %v506_v31 }
  0xc2   :  { %v2489_v9 = vpop.f32.mrf.mxu2  ;;  %779 = vperm.xlu2 %1713, %v581_v6   ;;  %v597_v6 = vld [vmem:[%s2909_s5 + $0x188] sm:$0xff]  ;;  %v2518_v56 = vpop.f32.mrf.mxu3 }
  0xc3   :  { %869 = vperm.xlu1 %1712, %v599_v46   ;;  %784 = vperm.xlu0 %1711, %v582_v55   ;;  %v580_v46 = vld [vmem:[%s2909_s5 + $0x100] sm:$0xff]  ;;  %v598_v55 = vld [vmem:[%s2909_s5 + $0x190] sm:$0xff]  ;;  %2948 = vst [vmem:[#allocation32_spill] sm:$0xff] %v2518_v56 }
  0xc4   :  { %v2494_v15 = vpop.f32.mrf.mxu1  ;;  %v2499_v31 = vpop.permute.xlu2 %644 }
  0xc5   :  { %v2501_v11 = vpop.permute.xlu1 %839  ;;  %v2503_v26 = vpop.permute.xlu0 %744 }
  0xc6   :  { %2947 = vst [vmem:[#allocation31_spill] sm:$0xff] %v2503_v26  ;;  %1629 = vmatmul.msk.f32.gmra.mxu0 %vm269_vm1, %v68_v10  ;;  %v69_v10 = vld [vmem:[%s2907_s2 + $0xc8] sm:$0xff]  ;;  %v107_v26 = vld [vmem:[%s2904_s3 + $0xf0] sm:$0xff] }
  0xc7   :  { %1662 = vmatmul.msk.f32.gmra.mxu1 %vm269_vm1, %v507_v12 }
  0xca   :  { %v2516_v41 = vpop.f32.mrf.mxu2  ;;  %859 = vperm.xlu2 %1713, %v597_v6   ;;  %v108_v6 = vld [vmem:[%s2904_s3 + $0xf8] sm:$0xff] }
  0xcb   :  { %774 = vperm.xlu1 %1712, %v580_v46   ;;  %864 = vperm.xlu0 %1711, %v598_v55   ;;  %v92_v46 = vld [vmem:[%s2904_s3 + $0x78] sm:$0xff]  ;;  %v596_v55 = vld [vmem:[%s2909_s5 + $0x180] sm:$0xff] }
  0xcc   :  { %v2523_v12 = vpop.f32.mrf.mxu1  ;;  %v2528_v5 = vpop.permute.xlu2 %909 }
  0xcd   :  { %2949 = vst [vmem:[#allocation33_spill] sm:$0xff] %v2528_v5  ;;  %v2530_v7 = vpop.permute.xlu1 %739  ;;  %v2532_v28 = vpop.permute.xlu0 %654  ;;  %v509_v5 = vld [vmem:[%s2908_s4 + $0xd0] sm:$0xff] }
  0xce   :  { %2950 = vst [vmem:[#allocation34_spill] sm:$0xff] %v2530_v7  ;;  %1630 = vmatmul.msk.f32.gmra.mxu0 %vm269_vm1, %v69_v10 }
  0xcf   :  { %1663 = vmatmul.msk.f32.gmra.mxu1 %vm269_vm1, %v508_v18  ;;  %v70_v18 = vld [vmem:[%s2907_s2 + $0xd0] sm:$0xff] }
  0xd2   :  { %v2545_v56 = vpop.f32.mrf.mxu2  ;;  %266 = vperm.xlu2 %1713, %v108_v6   ;;  %v2562_v6 = vpop.f32.mrf.mxu3 }
  0xd3   :  { %186 = vperm.xlu1 %1712, %v92_v46   ;;  %854 = vperm.xlu0 %1711, %v596_v55   ;;  %2952 = vst [vmem:[#allocation36_spill] sm:$0xff] %v2562_v6  ;;  %v105_v46 = vld [vmem:[%s2904_s3 + $0xe0] sm:$0xff]  ;;  %v106_v55 = vld [vmem:[%s2904_s3 + $0xe8] sm:$0xff]  ;;  %v510_v6 = vld [vmem:[%s2908_s4 + $0xd8] sm:$0xff] }
  0xd4   :  { %v2550_v10 = vpop.f32.mrf.mxu1  ;;  %v2555_v38 = vpop.permute.xlu2 %819 }
  0xd5   :  { %v2557_v37 = vpop.permute.xlu1 %649  ;;  %v2559_v7 = vpop.permute.xlu0 %919 }
  0xd6   :  { %2951 = vst [vmem:[#allocation35_spill] sm:$0xff] %v2559_v7  ;;  %1631 = vmatmul.msk.f32.gmra.mxu0 %vm269_vm1, %v70_v18 }
  0xd7   :  { %1664 = vmatmul.msk.f32.gmra.mxu1 %vm269_vm1, %v509_v5  ;;  %v71_v5 = vld [vmem:[%s2907_s2 + $0xd8] sm:$0xff] }
  0xda   :  { %v2574_v50 = vpop.f32.mrf.mxu2  ;;  %251 = vperm.xlu2 %1713, %v105_v46   ;;  %v103_v46 = vld [vmem:[%s2904_s3 + $0xd0] sm:$0xff] }
  0xdb   :  { %256 = vperm.xlu1 %1712, %v106_v55   ;;  %261 = vperm.xlu0 %1711, %v107_v26   ;;  %v102_v26 = vld [vmem:[%s2904_s3 + $0xc8] sm:$0xff]  ;;  %v104_v55 = vld [vmem:[%s2904_s3 + $0xd8] sm:$0xff] }
  0xdc   :  { %v2579_v18 = vpop.f32.mrf.mxu1  ;;  %v2584_v7 = vpop.permute.xlu2 %719 }
  0xdd   :  { %2953 = vst [vmem:[#allocation37_spill] sm:$0xff] %v2584_v7  ;;  %v2586_v34 = vpop.permute.xlu1 %914  ;;  %v2588_v33 = vpop.permute.xlu0 %829 }
  0xde   :  { %2954 = vst [vmem:[#allocation38_spill] sm:$0xff] %v2586_v34  ;;  %1632 = vmatmul.msk.f32.gmra.mxu0 %vm269_vm1, %v71_v5  ;;  %v2601_v7 = vpop.f32.mrf.mxu3  ;;  %v2605_v5 = vpop.f32.mrf.mxu0 }
  0xdf   :  { %1665 = vmatmul.msk.f32.gmra.mxu1 %vm269_vm1, %v510_v6  ;;  %2955 = vst [vmem:[#allocation39_spill] sm:$0xff] %v2605_v5  ;;  %v72_v6 = vld [vmem:[%s2907_s2 + $0xe0] sm:$0xff] }
  0xe2   :  { %v2603_v34 = vpop.f32.mrf.mxu2  ;;  %236 = vperm.xlu2 %1713, %v102_v26   ;;  %v99_v26 = vld [vmem:[%s2904_s3 + $0xb0] sm:$0xff] }
  0xe3   :  { %241 = vperm.xlu1 %1712, %v103_v46   ;;  %246 = vperm.xlu0 %1711, %v104_v55   ;;  %v100_v46 = vld [vmem:[%s2904_s3 + $0xb8] sm:$0xff]  ;;  %v101_v55 = vld [vmem:[%s2904_s3 + $0xc0] sm:$0xff] }
  0xe4   :  { %v2610_v63 = vpop.f32.mrf.mxu1  ;;  %v2615_v13 = vpop.permute.xlu2 %629 }
  0xe5   :  { %v2617_v59 = vpop.permute.xlu1 %824  ;;  %v2619_v29 = vpop.permute.xlu0 %729 }
  0xe6   :  { %2956 = vst [vmem:[#allocation40_spill] sm:$0xff] %v2619_v29  ;;  %1633 = vmatmul.msk.f32.gmra.mxu0 %vm269_vm1, %v72_v6  ;;  %v1312_v29 = vpop.f32.mrf.mxu3  ;;  %v2643_v23 = vpop.f32.mrf.mxu0 }
  0xe7   :  { %1666 = vmatmul.msk.f32.gmra.mxu1 %vm269_vm1, %v511_v49  ;;  %v512_v49 = vld [vmem:[%s2908_s4 + $0xe8] sm:$0xff]  ;;  %2958 = vst [vmem:[#allocation42_spill] sm:$0xff] %v2643_v23 }
  0xea   :  { %v2632_v48 = vpop.f32.mrf.mxu2  ;;  %221 = vperm.xlu2 %1713, %v99_v26   ;;  %v96_v26 = vld [vmem:[%s2904_s3 + $0x98] sm:$0xff] }
  0xeb   :  { %226 = vperm.xlu1 %1712, %v100_v46   ;;  %231 = vperm.xlu0 %1711, %v101_v55   ;;  %v97_v46 = vld [vmem:[%s2904_s3 + $0xa0] sm:$0xff] }
  0xec   :  { %v1183_v6 = vpop.f32.mrf.mxu1  ;;  %v895_v43 = vpop.permute.xlu2 %894 }
  0xed   :  { %v2637_v58 = vadd.f32 %v1312_v29, %v895_v43  ;;  %v2639_v24 = vpop.permute.xlu1 %724  ;;  %v2641_v61 = vpop.permute.xlu0 %639  ;;  %v98_v29 = vld [vmem:[%s2904_s3 + $0xa8] sm:$0xff] }
  0xee   :  { %v2665_v5 = vpop.f32.mrf.mxu0 }
  0xef   :  { %2957 = vst [vmem:[#allocation41_spill] sm:$0xff] %v2637_v58  ;;  %1667 = vmatmul.msk.f32.gmra.mxu1 %vm269_vm1, %v512_v49 }
  0xf0   :  { %2960 = vst [vmem:[#allocation44_spill] sm:$0xff] %v2665_v5  ;;  %v1337_v5 = vld [vmem:[%s2910_s6 + $0x8] sm:$0x77] }
  0xf1   :  { %1348 = vst [vmem:[#allocation1 + $0x10] ss:$2 sm:$0xff] %v1337_v5 }
  0xf2   :  { %v2655_v43 = vpop.f32.mrf.mxu2  ;;  %206 = vperm.xlu2 %1713, %v96_v26   ;;  %v1338_v26 = vld [vmem:[%s2911_s7] sm:$0x7] }
  0xf3   :  { %211 = vperm.xlu1 %1712, %v97_v46   ;;  %216 = vperm.xlu0 %1711, %v98_v29   ;;  %v95_v46 = vld [vmem:[%s2904_s3 + $0x90] sm:$0xff] }
  0xf4   :  { %v1186_v55 = vpop.f32.mrf.mxu1  ;;  %v2700_v5 = vpop.permute.xlu2 %804 }
  0xf5   :  { %v635_v58 = vpop.permute.xlu1 %634  ;;  %v2657_v49 = vpop.permute.xlu0 %904 }
  0xf6   :  { %2959 = vst [vmem:[#allocation43_spill] sm:$0xff] %v2657_v49  ;;  %v2696_v20 = vpop.f32.mrf.mxu0 }
  0xfa   :  { %196 = vperm.xlu2 %1713, %v94_v22   ;;  %v2673_v29 = vpop.f32.mrf.mxu2  ;;  %v2686_v22 = vld.sshfl [vmem:[#allocation1 + $0x8] sm:$0xff pattern:$0x75316420] }
  0xfb   :  { %1341 = vperm.xlu1 %1712, %v1338_v26   ;;  %201 = vperm.xlu0 %1711, %v95_v46   ;;  %v1187_v26 = vadd.f32 %v1186_v55, %v2344_v51  ;;  %v1349_v46 = vld.sshfl [vmem:[#allocation1] sm:$0xff pattern:$0x75316420]  ;;  %v1181_v51 = vadd.f32 %v2610_v63, %v2280_v19  ;;  %v1169_v63 = vadd.f32 %v2494_v15, %v2532_v28 }
  0xfc   :  { %v1189_v53 = vpop.f32.mrf.mxu1  ;;  %v1157_v28 = vadd.f32 %v2368_v0, %v635_v58 }
  0xfd   :  { %v1190_v49 = vadd.f32 %v1189_v53, %v2346_v52  ;;  %v2676_v39 = vpop.permute.xlu1 %899  ;;  %v2678_v23 = vpop.permute.xlu0 %814  ;;  %v1437_v52 = vld [vmem:[%s2913_s8] sm:$0x77] }
  0xfe   :  { %2961 = vst [vmem:[#allocation45_spill] sm:$0xff] %v2676_v39  ;;  %v93_v53 = vld [vmem:[%s2904_s3 + $0x80] sm:$0xff]  ;;  %v1184_v39 = vadd.f32 %v1183_v6, %v2378_v8  ;;  %v2714_v19 = vpop.f32.mrf.mxu0 }
  0xff   :  { %1357 = vmatpush.msrb.mxu2 %v1190_v49  ;;  %1445 = vst [vmem:[#allocation1] ss:$2 sm:$0xff] %v1437_v52  ;;  %v1178_v49 = vadd.f32 %v2579_v18, %v2410_v30  ;;  %v1166_v18 = vadd.f32 %v2465_v27, %v2557_v37  ;;  %v1154_v27 = vadd.f32 %v2337_v45, %v2615_v13 }
 0x101   :  { %1358 = vmatpush.msrb.mxu2 %v1187_v26 }
 0x102   :  { %1441 = vperm.xlu2 %1713, %v1438_v21   ;;  %v1279_v6 = vpop.f32.mrf.mxu2  ;;  %v1175_v21 = vadd.f32 %v2550_v10, %v2440_v1  ;;  %v1163_v1 = vadd.f32 %v2433_v54, %v2499_v31 }
 0x103   :  { %1359 = vmatpush.msrb.mxu2 %v1184_v39  ;;  %191 = vperm.xlu0 %1711, %v93_v53   ;;  %v1172_v39 = vadd.f32 %v2523_v12, %v2373_v3  ;;  %v1160_v12 = vadd.f32 %v2403_v25, %v2641_v61 }
 0x104   :  { %v2702_v55 = vpop.f32.mrf.mxu1 }
 0x105   :  { %1360 = vmatpush.msrb.mxu2 %v1181_v51  ;;  %v2706_v52 = vpop.permute.xlu1 %809  ;;  %v715_v8 = vpop.permute.xlu0 %714 }
 0x106   :  { %v705_v51 = vpop.permute.xlu2 %704 }
 0x107   :  { %1361 = vmatpush.msrb.mxu2 %v1178_v49 }
 0x109   :  { %1362 = vmatpush.msrb.mxu2 %v1175_v21  ;;  %v2727_v21 = vpop.f32.mrf.mxu0 }
 0x10a   :  { %v1282_v3 = vpop.f32.mrf.mxu2 }
 0x10b   :  { %1363 = vmatpush.msrb.mxu2 %v1172_v39 }
 0x10c   :  { %v1195_v30 = vpop.f32.mrf.mxu1 }
 0x10d   :  { %1364 = vmatpush.msrb.mxu2 %v1169_v63  ;;  %v710_v26 = vpop.permute.xlu1 %709  ;;  %v625_v53 = vpop.permute.xlu0 %624 }
 0x10e   :  { %v1151_v61 = vadd.f32 %v2306_v32, %v625_v53  ;;  %v615_v0 = vpop.permute.xlu2 %614  ;;  %v1283_v32 = vadd.f32 %v1282_v3, %v2474_v44 }
 0x10f   :  { %1365 = vmatpush.msrb.mxu2 %v1166_v18  ;;  %v1145_v13 = vadd.f32 %v2235_v2, %v615_v0  ;;  %v1280_v18 = vadd.f32 %v1279_v6, %v2501_v11  ;;  %v1277_v2 = vadd.f32 %v2673_v29, %v2438_v62  ;;  %v1271_v11 = vadd.f32 %v2632_v48, %v2617_v59 }
 0x110   :  { %v1268_v6 = vadd.f32 %v2603_v34, %v2555_v38  ;;  %v1265_v29 = vadd.f32 %v2574_v50, %v2678_v23  ;;  %v1259_v34 = vadd.f32 %v2516_v41, %v2700_v5 }
 0x111   :  { %1366 = vmatpush.msrb.mxu2 %v1163_v1 }
 0x112   :  { %v1285_v25 = vpop.f32.mrf.mxu2 }
 0x113   :  { %1367 = vmatpush.msrb.mxu2 %v1160_v12  ;;  %v1286_v31 = vadd.f32 %v1285_v25, %v2442_v4  ;;  %v421_v25 = vadd.f32 %v2696_v20, %v2177_v47  ;;  %v2968_v47 = vld [vmem:[#allocation27_spill] sm:$0xff]  ;;  %v2969_v20 = vld [vmem:[#allocation25_spill] sm:$0xff] }
 0x114   :  { %v1198_v15 = vpop.f32.mrf.mxu1 }
 0x115   :  { %v2725_v37 = vadd.f32 %v1198_v15, %v705_v51  ;;  %1368 = vmatpush.msrb.mxu2 %v1157_v28  ;;  %v620_v10 = vpop.permute.xlu1 %619  ;;  %v890_v49 = vpop.permute.xlu0 %889 }
 0x116   :  { %v2730_v54 = vadd.f32 %v2601_v7, %v890_v49  ;;  %v1148_v58 = vadd.f32 %v2272_v16, %v620_v10  ;;  %v429_v16 = vpop.f32.mrf.mxu0  ;;  %v2742_v53 = vpop.permute.xlu2 %879 }
 0x117   :  { %1369 = vmatpush.msrb.mxu2 %v1154_v27 }
 0x119   :  { %1370 = vmatpush.msrb.mxu2 %v1151_v61 }
 0x11b   :  { %1371 = vmatpush.msrb.mxu2 %v1148_v58  ;;  %v427_v58 = vadd.f32 %v2727_v21, %v2313_v35  ;;  %v2966_v35 = vld [vmem:[#allocation3_spill] sm:$0xff] }
 0x11c   :  { %v1201_v45 = vpop.f32.mrf.mxu1  ;;  %v2967_v21 = vld [vmem:[#allocation39_spill] sm:$0xff] }
 0x11d   :  { %v2736_v39 = vadd.f32 %v1201_v45, %v710_v26  ;;  %1372 = vmatpush.msrb.mxu2 %v1145_v13  ;;  %v2738_v63 = vpop.permute.xlu1 %884  ;;  %v800_v7 = vpop.permute.xlu0 %799  ;;  %v1274_v26 = vadd.f32 %v2655_v43, %v2588_v33  ;;  %v2962_v13 = vld [vmem:[#allocation11_spill] sm:$0xff] }
 0x11e   :  { %1373 = vmatmul.f32.vlgmr.msrb.gmra.mxu2 %v1349_v46  ;;  %v432_v62 = vpop.f32.mrf.mxu0  ;;  %v2758_v33 = vpop.permute.xlu2 %874  ;;  %v1256_v23 = vadd.f32 %v2489_v9, %v800_v7  ;;  %v2965_v7 = vld [vmem:[#allocation42_spill] sm:$0xff] }
 0x11f   :  { %1397 = vmatpush.msra.mxu2 %v1286_v31  ;;  %v2964_v31 = vld [vmem:[#allocation12_spill] sm:$0xff] }
 0x121   :  { %1398 = vmatpush.msra.mxu2 %v1283_v32  ;;  %v415_v32 = vadd.f32 %v2965_v7, %v2964_v31  ;;  %v2985_v7 = vld [vmem:[#allocation34_spill] sm:$0xff] }
 0x123   :  { %1399 = vmatpush.msra.mxu2 %v1280_v18  ;;  %v412_v18 = vadd.f32 %v2967_v21, %v2966_v35  ;;  %v2986_v35 = vld [vmem:[#allocation28_spill] sm:$0xff] }
 0x124   :  { %v1204_v4 = vpop.f32.mrf.mxu1 }
 0x125   :  { %v2748_v51 = vadd.f32 %v1204_v4, %v715_v8  ;;  %1400 = vmatpush.msra.mxu2 %v1277_v2  ;;  %v795_v46 = vpop.permute.xlu1 %794  ;;  %v700_v44 = vpop.permute.xlu0 %699  ;;  %v1262_v8 = vadd.f32 %v2545_v56, %v2706_v52  ;;  %v2970_v2 = vld [vmem:[#allocation2_spill] sm:$0xff]  ;;  %v2971_v4 = vld [vmem:[#allocation20_spill] sm:$0xff] }
 0x126   :  { %v2750_v1 = vadd.f32 %v1195_v30, %v700_v44  ;;  %v1253_v50 = vadd.f32 %v2457_v14, %v795_v46  ;;  %v2771_v38 = vpop.f32.mrf.mxu0  ;;  %v780_v41 = vpop.permute.xlu2 %779 }
 0x127   :  { %1401 = vmatpush.msra.mxu2 %v1274_v26  ;;  %v1244_v9 = vadd.f32 %v2361_v60, %v780_v41  ;;  %v2789_v60 = vpop.f32.mrf.mxu3  ;;  %v400_v26 = vadd.f32 %v2971_v4, %v2970_v2  ;;  %v2988_v4 = vld [vmem:[#allocation37_spill] sm:$0xff] }
 0x129   :  { %1402 = vmatpush.msra.mxu2 %v1271_v11  ;;  %v2972_v11 = vld [vmem:[#allocation22_spill] sm:$0xff] }
 0x12b   :  { %1403 = vmatpush.msra.mxu2 %v1268_v6  ;;  %v2973_v6 = vld [vmem:[#allocation6_spill] sm:$0xff] }
 0x12c   :  { %v2760_v43 = vpop.f32.mrf.mxu1 }
 0x12d   :  { %1404 = vmatpush.msra.mxu2 %v1265_v29  ;;  %v790_v30 = vpop.permute.xlu1 %789  ;;  %v695_v48 = vpop.permute.xlu0 %694 }
 0x12e   :  { %v2765_v59 = vadd.f32 %v2702_v55, %v695_v48  ;;  %v1250_v56 = vadd.f32 %v2425_v40, %v790_v30  ;;  %v2783_v15 = vpop.f32.mrf.mxu0  ;;  %v1351_v40 = vld.sshfl [vmem:[#allocation1 + $0x10] sm:$0xff pattern:$0x75316420]  ;;  %v2975_v30 = vld [vmem:[#allocation4_spill] sm:$0xff]  ;;  %v2976_v48 = vld [vmem:[#allocation14_spill] sm:$0xff] }
 0x12f   :  { %1405 = vmatpush.msra.mxu2 %v1262_v8 }
 0x131   :  { %1406 = vmatpush.msra.mxu2 %v1259_v34  ;;  %v394_v34 = vadd.f32 %v2976_v48, %v2975_v30  ;;  %v2993_v48 = vld [vmem:[#allocation33_spill] sm:$0xff] }
 0x133   :  { %1407 = vmatpush.msra.mxu2 %v1256_v23  ;;  %v2977_v23 = vld [vmem:[#allocation7_spill] sm:$0xff] }
 0x134   :  { %v1210_v3 = vpop.f32.mrf.mxu1 }
 0x135   :  { %v2775_v52 = vadd.f32 %v1210_v3, %v2639_v24  ;;  %1408 = vmatpush.msra.mxu2 %v1253_v50  ;;  %v2777_v55 = vpop.permute.xlu1 %869  ;;  %v785_v12 = vpop.permute.xlu0 %784  ;;  %v2978_v50 = vld [vmem:[#allocation10_spill] sm:$0xff] }
 0x136   :  { %v1247_v5 = vadd.f32 %v2393_v17, %v785_v12  ;;  %v430_v17 = vadd.f32 %v429_v16, %v2208_v57  ;;  %v2787_v61 = vpop.f32.mrf.mxu0  ;;  %v2963_v57 = vld [vmem:[#allocation44_spill] sm:$0xff]  ;;  %v391_v3 = vadd.f32 %v2978_v50, %v2977_v23  ;;  %v2994_v23 = vld [vmem:[#allocation43_spill] sm:$0xff] }
 0x137   :  { %1409 = vmatpush.msra.mxu2 %v1250_v56  ;;  %v418_v45 = vadd.f32 %v2963_v57, %v2962_v13  ;;  %v2979_v56 = vld [vmem:[#allocation5_spill] sm:$0xff]  ;;  %v2980_v12 = vld [vmem:[#allocation8_spill] sm:$0xff] }
 0x138   :  { %v388_v41 = vadd.f32 %v2980_v12, %v2979_v56  ;;  %v2996_v56 = vld [vmem:[#allocation41_spill] sm:$0xff] }
 0x139   :  { %1410 = vmatpush.msra.mxu2 %v1247_v5 }
 0x13b   :  { %1411 = vmatpush.msra.mxu2 %v1244_v9  ;;  %v1446_v9 = vld.sshfl [vmem:[#allocation1] sm:$0xff pattern:$0x75316420] }
 0x13c   :  { %v2781_v14 = vpop.f32.mrf.mxu1 }
 0x13d   :  { %v775_v28 = vpop.permute.xlu1 %774 }
 0x13e   :  { %v1241_v24 = vadd.f32 %v2330_v42, %v775_v28  ;;  %v424_v42 = vadd.f32 %v2714_v19, %v2315_v36  ;;  %v2801_v16 = vpop.f32.mrf.mxu0  ;;  %v2805_v36 = vpop.f32.mrf.mxu3 }
 0x140   :  { %1412 = vmatpush.msra.mxu2 %v1241_v24 }
 0x141   :  { %1413 = vmatmul.f32.vlgmr.msra.gmra.mxu2 %v1351_v40 }
 0x144   :  { %v1216_v27 = vpop.f32.mrf.mxu1 }
 0x145   :  { %v187_v10 = vpop.permute.xlu1 %186  ;;  %v1217_v21 = vadd.f32 %v1216_v27, %v2986_v35 }
 0x146   :  { %v433_v49 = vadd.f32 %v432_v62, %v187_v10  ;;  %v2811_v46 = vpop.f32.mrf.mxu0  ;;  %v2974_v62 = vld [vmem:[#allocation17_spill] sm:$0xff]  ;;  %v1321_v8 = vpop.f32.mrf.mxu3  ;;  %v2981_v10 = vld [vmem:[#allocation24_spill] sm:$0xff] }
 0x147   :  { %v397_v29 = vadd.f32 %v2974_v62, %v2973_v6 }
 0x148   :  { %1450 = vmatpush.msrb.mxu2 %v433_v49 }
 0x14a   :  { %1451 = vmatpush.msrb.mxu2 %v430_v17  ;;  %v2982_v17 = vld [vmem:[#allocation15_spill] sm:$0xff] }
 0x14c   :  { %v1219_v0 = vpop.f32.mrf.mxu1  ;;  %1452 = vmatpush.msrb.mxu2 %v427_v58 }
 0x14e   :  { %1453 = vmatpush.msrb.mxu2 %v424_v42  ;;  %v2822_v28 = vpop.f32.mrf.mxu0  ;;  %v1324_v24 = vpop.f32.mrf.mxu3 }
 0x150   :  { %1454 = vmatpush.msrb.mxu2 %v421_v25  ;;  %v2983_v25 = vld [vmem:[#allocation18_spill] sm:$0xff] }
 0x152   :  { %1455 = vmatpush.msrb.mxu2 %v418_v45  ;;  %v2984_v45 = vld [vmem:[#allocation31_spill] sm:$0xff] }
 0x154   :  { %v1222_v19 = vpop.f32.mrf.mxu1  ;;  %1456 = vmatpush.msrb.mxu2 %v415_v32  ;;  %v1220_v32 = vadd.f32 %v1219_v0, %v2985_v7  ;;  %v860_v0 = vpop.permute.xlu2 %859 }
 0x155   :  { %v1223_v31 = vadd.f32 %v1222_v19, %v2984_v45  ;;  %v865_v19 = vpop.permute.xlu0 %864 }
 0x156   :  { %1457 = vmatpush.msrb.mxu2 %v412_v18  ;;  %v2826_v42 = vpop.f32.mrf.mxu0  ;;  %v1327_v57 = vpop.f32.mrf.mxu3  ;;  %v2987_v18 = vld [vmem:[#allocation40_spill] sm:$0xff] }
 0x158   :  { %1458 = vmatpush.msrb.mxu2 %v2968_v47  ;;  %v1214_v47 = vadd.f32 %v2781_v14, %v2987_v18  ;;  %v3005_v18 = vld [vmem:[#allocation9_spill] sm:$0xff] }
 0x15a   :  { %1459 = vmatpush.msrb.mxu2 %v2969_v20 }
 0x15c   :  { %v1225_v44 = vpop.f32.mrf.mxu1  ;;  %1460 = vmatpush.msrb.mxu2 %v2972_v11  ;;  %v2989_v11 = vld [vmem:[#allocation29_spill] sm:$0xff]  ;;  %v267_v30 = vpop.permute.xlu2 %266 }
 0x15d   :  { %v1226_v13 = vadd.f32 %v1225_v44, %v2983_v25  ;;  %v855_v44 = vpop.permute.xlu0 %854 }
 0x15e   :  { %1461 = vmatpush.msrb.mxu2 %v400_v26  ;;  %v2834_v20 = vpop.f32.mrf.mxu0  ;;  %v1330_v2 = vpop.f32.mrf.mxu3  ;;  %v1208_v26 = vadd.f32 %v2760_v43, %v2988_v4  ;;  %v2990_v43 = vld [vmem:[#allocation23_spill] sm:$0xff] }
 0x160   :  { %1462 = vmatpush.msrb.mxu2 %v397_v29  ;;  %v2992_v29 = vld [vmem:[#allocation38_spill] sm:$0xff] }
 0x162   :  { %1463 = vmatpush.msrb.mxu2 %v394_v34 }
 0x164   :  { %v1228_v5 = vpop.f32.mrf.mxu1  ;;  %1464 = vmatpush.msrb.mxu2 %v391_v3  ;;  %v252_v12 = vpop.permute.xlu2 %251 }
 0x165   :  { %v1229_v58 = vadd.f32 %v1228_v5, %v2982_v17  ;;  %v262_v34 = vpop.permute.xlu0 %261 }
 0x166   :  { %1465 = vmatpush.msrb.mxu2 %v388_v41  ;;  %v2841_v27 = vpop.f32.mrf.mxu0  ;;  %v1333_v14 = vpop.f32.mrf.mxu3  ;;  %v2997_v41 = vld [vmem:[#allocation36_spill] sm:$0xff] }
 0x167   :  { %1466 = vmatmul.f32.vlgmr.msrb.gmra.mxu2 %v1446_v9  ;;  %v1334_v6 = vadd.f32 %v1333_v14, %v2989_v11  ;;  %v1307_v5 = vadd.f32 %v2997_v41, %v2738_v63  ;;  %v2998_v9 = vld [vmem:[#allocation32_spill] sm:$0xff] }
 0x16c   :  { %v1231_v40 = vpop.f32.mrf.mxu1  ;;  %v237_v63 = vpop.permute.xlu2 %236 }
 0x16d   :  { %v1232_v49 = vadd.f32 %v1231_v40, %v2981_v10  ;;  %v2999_v40 = vld [vmem:[#allocation30_spill] sm:$0xff] }
 0x16e   :  { %v462_v62 = vpop.f32.mrf.mxu0  ;;  %v3000_v10 = vld [vmem:[#allocation26_spill] sm:$0xff] }
 0x16f   :  { %1379 = vmatpush.msra.mxu3 %v1232_v49  ;;  %v1298_v49 = vadd.f32 %v3000_v10, %v2777_v55  ;;  %v3004_v55 = vld [vmem:[#allocation13_spill] sm:$0xff] }
 0x170   :  { %v478_v35 = vadd.f32 %v3004_v55, %v262_v34 }
 0x171   :  { %1380 = vmatpush.msra.mxu3 %v1229_v58  ;;  %v3001_v58 = vld [vmem:[#allocation21_spill] sm:$0xff] }
 0x172   :  { %v1295_v25 = vadd.f32 %v3001_v58, %v865_v19 }
 0x173   :  { %1381 = vmatpush.msra.mxu3 %v1226_v13  ;;  %v3002_v13 = vld [vmem:[#allocation19_spill] sm:$0xff] }
 0x175   :  { %1382 = vmatpush.msra.mxu3 %v1223_v31  ;;  %v1352_v31 = vld.sshfl [vmem:[#allocation1 + $0x18] sm:$0xff pattern:$0x75316420] }
 0x176   :  { %v465_v3 = vpop.f32.mrf.mxu0 }
 0x177   :  { %1383 = vmatpush.msra.mxu3 %v1220_v32 }
 0x179   :  { %1384 = vmatpush.msra.mxu3 %v1217_v21 }
 0x17b   :  { %1385 = vmatpush.msra.mxu3 %v1214_v47 }
 0x17d   :  { %1386 = vmatpush.msra.mxu3 %v2775_v52  ;;  %v1331_v52 = vadd.f32 %v1330_v2, %v2990_v43  ;;  %v222_v2 = vpop.permute.xlu2 %221 }
 0x17e   :  { %v468_v17 = vpop.f32.mrf.mxu0 }
 0x17f   :  { %1387 = vmatpush.msra.mxu3 %v1208_v26 }
 0x181   :  { %1388 = vmatpush.msra.mxu3 %v2748_v51  ;;  %v2991_v51 = vld [vmem:[#allocation35_spill] sm:$0xff] }
 0x183   :  { %1389 = vmatpush.msra.mxu3 %v2736_v39  ;;  %v1328_v39 = vadd.f32 %v1327_v57, %v2991_v51  ;;  %v1292_v57 = vadd.f32 %v3002_v13, %v860_v0  ;;  %v454_v51 = vadd.f32 %v2826_v42, %v222_v2 }
 0x185   :  { %1390 = vmatpush.msra.mxu3 %v2725_v37  ;;  %v1325_v37 = vadd.f32 %v1324_v24, %v2992_v29  ;;  %v1304_v24 = vadd.f32 %v2998_v9, %v2742_v53 }
 0x186   :  { %v471_v21 = vpop.f32.mrf.mxu0 }
 0x187   :  { %1391 = vmatpush.msra.mxu3 %v2750_v1  ;;  %v1322_v1 = vadd.f32 %v1321_v8, %v2993_v48  ;;  %v247_v8 = vpop.permute.xlu0 %246  ;;  %v472_v4 = vadd.f32 %v471_v21, %v252_v12 }
 0x188   :  { %v469_v19 = vadd.f32 %v468_v17, %v247_v8 }
 0x189   :  { %1392 = vmatpush.msra.mxu3 %v2765_v59  ;;  %v1319_v59 = vadd.f32 %v2805_v36, %v2994_v23  ;;  %v257_v36 = vpop.permute.xlu1 %256 }
 0x18a   :  { %1393 = vmatmul.f32.vlgmr.msra.gmra.mxu3 %v2686_v22  ;;  %v2995_v22 = vld [vmem:[#allocation45_spill] sm:$0xff]  ;;  %v475_v47 = vadd.f32 %v3005_v18, %v257_v36 }
 0x18b   :  { %1417 = vmatpush.msrb.mxu3 %v1334_v6  ;;  %v1316_v50 = vadd.f32 %v2789_v60, %v2995_v22  ;;  %v1301_v60 = vadd.f32 %v2999_v40, %v2758_v33  ;;  %v3003_v33 = vld [vmem:[#allocation16_spill] sm:$0xff]  ;;  %v207_v6 = vpop.permute.xlu2 %206 }
 0x18c   :  { %v481_v32 = vadd.f32 %v3003_v33, %v267_v30 }
 0x18d   :  { %1418 = vmatpush.msrb.mxu3 %v1331_v52 }
 0x18f   :  { %1419 = vmatpush.msrb.mxu3 %v1328_v39  ;;  %v232_v53 = vpop.permute.xlu0 %231 }
 0x190   :  { %v460_v11 = vadd.f32 %v2841_v27, %v232_v53 }
 0x191   :  { %1420 = vmatpush.msrb.mxu3 %v1325_v37  ;;  %v242_v7 = vpop.permute.xlu1 %241 }
 0x192   :  { %v466_v0 = vadd.f32 %v465_v3, %v242_v7 }
 0x193   :  { %1421 = vmatpush.msrb.mxu3 %v1322_v1  ;;  %v197_v27 = vpop.permute.xlu2 %196  ;;  %v1447_v1 = vld.sshfl [vmem:[#allocation1 + $0x8] sm:$0xff pattern:$0x75316420] }
 0x194   :  { %v439_v48 = vadd.f32 %v2783_v15, %v197_v27 }
 0x195   :  { %1422 = vmatpush.msrb.mxu3 %v1319_v59 }
 0x197   :  { %1423 = vmatpush.msrb.mxu3 %v1316_v50  ;;  %v217_v26 = vpop.permute.xlu0 %216 }
 0x198   :  { %v451_v29 = vadd.f32 %v2822_v28, %v217_v26  ;;  %v1567_v26 = vld [vmem:[%s2915_s11] sm:$0x7] }
 0x199   :  { %1424 = vmatpush.msrb.mxu3 %v2996_v56  ;;  %v227_v14 = vpop.permute.xlu1 %226 }
 0x19a   :  { %v457_v43 = vadd.f32 %v2834_v20, %v227_v14 }
 0x19b   :  { %1425 = vmatpush.msrb.mxu3 %v2730_v54  ;;  %v1288_v54 = vpop.f32.mrf.mxu2  ;;  %v1442_v56 = vpop.permute.xlu2 %1441 }
 0x19c   :  { %v1289_v45 = vadd.f32 %v1288_v54, %v855_v44  ;;  %v463_v44 = vadd.f32 %v462_v62, %v237_v63  ;;  %v445_v62 = vadd.f32 %v2801_v16, %v207_v6 }
 0x19d   :  { %1426 = vmatpush.msrb.mxu3 %v1307_v5 }
 0x19f   :  { %1427 = vmatpush.msrb.mxu3 %v1304_v24  ;;  %v202_v52 = vpop.permute.xlu0 %201 }
 0x1a0   :  { %v442_v30 = vadd.f32 %v2787_v61, %v202_v52  ;;  %v1490_v61 = vld [vmem:[%s2914_s10] sm:$0xff] }
 0x1a1   :  { %1428 = vmatpush.msrb.mxu3 %v1301_v60  ;;  %v212_v39 = vpop.permute.xlu1 %211 }
 0x1a2   :  { %v448_v37 = vadd.f32 %v2811_v46, %v212_v39  ;;  %v1491_v46 = vld [vmem:[%s2914_s10 + $0x8] sm:$0xff]  ;;  %s1718_s10 = smov 64  }
 0x1a3   :  { %1429 = vmatpush.msrb.mxu3 %v1298_v49  ;;  %1510 = vmatpush.msra.mxu2 %v1491_v46  ;;  %v1374_v15 = vpop.f32.mrf.mxu2 }
 0x1a5   :  { %1430 = vmatpush.msrb.mxu3 %v1295_v25  ;;  %1511 = vmatpush.msra.mxu2 %v1490_v61 }
 0x1a7   :  { %1431 = vmatpush.msrb.mxu3 %v1292_v57  ;;  %v192_v20 = vpop.permute.xlu0 %191 }
 0x1a8   :  { %v436_v42 = vadd.f32 %v2771_v38, %v192_v20 }
 0x1a9   :  { %1432 = vmatpush.msrb.mxu3 %v1289_v45  ;;  %v1342_v16 = vpop.permute.xlu1 %1341 }
 0x1aa   :  { %1433 = vmatmul.f32.vlgmr.msrb.gmra.mxu3 %v1352_v31  ;;  %v1375_v38 = vadd.f32 %v1374_v15, %v1342_v16 }
 0x1ab   :  { %1470 = vmatpush.msra.mxu3 %v481_v32 }
 0x1ad   :  { %1471 = vmatpush.msra.mxu3 %v478_v35 }
 0x1af   :  { %1472 = vmatpush.msra.mxu3 %v475_v47 }
 0x1b1   :  { %1473 = vmatpush.msra.mxu3 %v472_v4 }
 0x1b3   :  { %1474 = vmatpush.msra.mxu3 %v469_v19 }
 0x1b5   :  { %1475 = vmatpush.msra.mxu3 %v466_v0 }
 0x1b7   :  { %1476 = vmatpush.msra.mxu3 %v463_v44  ;;  %v1580_v44 = vld [vmem:[%s2916_s12] sm:$0x7] }
 0x1b9   :  { %1477 = vmatpush.msra.mxu3 %v460_v11 }
 0x1bb   :  { %1478 = vmatpush.msra.mxu3 %v457_v43 }
 0x1bd   :  { %1479 = vmatpush.msra.mxu3 %v454_v51 }
 0x1bf   :  { %1480 = vmatpush.msra.mxu3 %v451_v29 }
 0x1c1   :  { %1481 = vmatpush.msra.mxu3 %v448_v37 }
 0x1c3   :  { %1482 = vmatpush.msra.mxu3 %v445_v62 }
 0x1c4   :  { %v1414_v23 = vpop.f32.mrf.mxu2 }
 0x1c5   :  { %1483 = vmatpush.msra.mxu3 %v442_v30 }
 0x1c7   :  { %1484 = vmatpush.msra.mxu3 %v439_v48 }
 0x1c9   :  { %1485 = vmatpush.msra.mxu3 %v436_v42 }
 0x1ca   :  { %1486 = vmatmul.f32.vlgmr.msra.gmra.mxu3 %v1447_v1 }
 0x1cb   :  { %1538 = vmatpush.msrb.mxu3 %v1491_v46 }
 0x1cd   :  { %1539 = vmatpush.msrb.mxu3 %v1490_v61 }
 0x1ea   :  { %v1467_v3 = vpop.f32.mrf.mxu2 }
 0x1eb   :  { %v1468_v12 = vadd.f32 %v1467_v3, %v1442_v56 }
 0x20d   :  { %v1394_v28 = vpop.f32.mrf.mxu3 }
 0x20e   :  { %v1395_v34 = vadd.f32 %v1394_v28, %v1375_v38 }
 0x210   :  { %v1415_v59 = vadd.f32 %v1414_v23, %v1395_v34 }
 0x22d   :  { %v1434_v22 = vpop.f32.mrf.mxu3 }
 0x22e   :  { %v1435_v50 = vadd.f32 %v1434_v22, %v1415_v59 }
 0x230   :  { %1516 = vrot.lane.b32.xlu1 %v1435_v50, %s1717_s19  ;;  %1702 = vmatmul.msk.f32.vlgmr.msra.gmra.mxu2 %vm1492_vm2, %v1435_v50 }
 0x24d   :  { %v1487_v41 = vpop.f32.mrf.mxu3 }
 0x24e   :  { %v1488_v5 = vadd.f32 %v1487_v41, %v1468_v12 }
 0x250   :  { %1519 = vrot.lane.b32.xlu0 %v1488_v5, %s1718_s10 }
 0x2a2   :  { %v1517_v8 = vpop.permute.xlu1 %1516 }
 0x2a3   :  { %1703 = vmatmul.msk.f32.vlgmr.msrb.gmra.mxu3 %vm1492_vm2, %v1517_v8 }
 0x2b3   :  { %v1513_v9 = vpop.f32.mrf.mxu2 }
 0x2b4   :  { %v1514_v24 = vadd.f32 %v1513_v9, %v1488_v5 }
 0x2b6   :  { %v1545_v36 = vsel %vm1544_vm3, %v1514_v24, 0.0 }
 0x2b7   :  { %1546 = vadd.xlane.f32.xlu1 %v1545_v36 }
 0x2c2   :  { %v1520_v40 = vpop.permute.xlu0 %1519 }
 0x326   :  { %v1541_v60 = vpop.f32.mrf.mxu3 }
 0x327   :  { %v1542_v10 = vadd.f32 %v1541_v60, %v1520_v40 }
 0x329   :  { %v1549_v49 = vsel %vm1544_vm3, %v1542_v10, 0.0 }
 0x32a   :  { %1550 = vadd.xlane.f32.xlu2 %v1549_v49  ;;  %v1547_v17 = vpop.xlane.xlu1 %1546 }
 0x39d   :  { %v1551_v58 = vpop.xlane.xlu2 %1550 }
 0x39e   :  { %v1552_v25 = vadd.f32 %v1551_v58, %v1547_v17 }
 0x3a0   :  { %v1553_v63 = vmul.f32 0.0078125, %v1552_v25 }
 0x3a2   :  { %v1560_v54 = vsub.f32 %v1542_v10, %v1553_v63  ;;  %v1554_v13 = vsub.f32 %v1514_v24, %v1553_v63 }
 0x3a4   :  { %v1561_v57 = vmul.f32 %v1560_v54, %v1560_v54  ;;  %v1555_v53 = vmul.f32 %v1554_v13, %v1554_v13 }
 0x3a6   :  { %v1562_v45 = vsel %vm1544_vm3, %v1561_v57, 0.0  ;;  %v1556_v31 = vsel %vm1544_vm3, %v1555_v53, 0.0 }
 0x3a7   :  { %1563 = vadd.xlane.f32.xlu2 %v1562_v45  ;;  %1557 = vadd.xlane.f32.xlu0 %v1556_v31 }
 0x41a   :  { %v1564_v7 = vpop.xlane.xlu2 %1563  ;;  %v1558_v33 = vpop.xlane.xlu0 %1557 }
 0x41b   :  { %v1565_v32 = vadd.f32 %v1564_v7, %v1558_v33 }
 0x41d   :  { %v1566_v55 = vmul.f32 0.0078125, %v1565_v32 }
 0x41f   :  { %v1568_v35 = vadd.f32 1e-05, %v1566_v55 }
 0x421   :  { %1714 = vrsqrt.f32 %v1568_v35  ;;  %vm1575_vm5 = vweird.f32 %v1568_v35 }
 0x427   :  { %v1715_v21 = vpop.eup %1714 }
 0x428   :  { %v1570_v18 = vmul.f32 %v1715_v21, %v1568_v35  ;;  %vm1576_vm4 = vweird.f32 %v1715_v21 }
 0x429   :  { %vm1577_vm6 = vmor %vm1575_vm5, %vm1576_vm4 }
 0x42a   :  { %v1571_v47 = vmul.f32 %v1715_v21, %v1570_v18 }
 0x42c   :  { %v1572_v2 = vmul.f32 0.5, %v1571_v47 }
 0x42e   :  { %v1573_v4 = vsub.f32 1.5, %v1572_v2 }
 0x430   :  { %v1574_v19 = vmul.f32 %v1715_v21, %v1573_v4 }
 0x432   :  { %v1578_v14 = vsel %vm1577_vm6, %v1715_v21, %v1574_v19 }
 0x433   :  { %v1579_v0 = vmul.f32 %v1578_v14, %v1567_v26 }
 0x435   :  { %1585 = vperm.xlu1 %1712, %v1579_v0   ;;  %v1581_v11 = vmul.f32 %v1579_v0, %v1553_v63 }
 0x437   :  { %v1582_v6 = vsub.f32 %v1580_v44, %v1581_v11 }
 0x439   :  { %1591 = vperm.xlu2 %1713, %v1582_v6  }
 0x493   :  { %v1592_v39 = vpop.permute.xlu2 %1591 }
 0x4a7   :  { %v1586_v43 = vpop.permute.xlu1 %1585 }
 0x4a8   :  { %v1588_v52 = vmul.f32 %v1586_v43, %v1514_v24  ;;  %v1596_v51 = vmul.f32 %v1586_v43, %v1542_v10 }
 0x4aa   :  { %v1594_v29 = vadd.f32 %v1592_v39, %v1588_v52  ;;  %v1597_v37 = vadd.f32 %v1596_v51, %v1592_v39 }
 0x4ac   :  { %1595 = vst.msk [vmem:[%s2917_s13] sm:$0x7] %vm1544_vm3, %v1594_v29 }
 0x4ad   :  { %1704 = vst.msk [vmem:[%s2917_s13 + $0x4] sm:$0x7] %vm1544_vm3, %v1597_v37 }

</bundles_post_ra>
